<compile_context>
chip_gen: v7x
topology: tpu7x:2x2x1
jax: 0.10.0
libtpu: 0.0.40
codegen_flags: <defaults>
</compile_context>

<pallas_src>
import functools

import jax
import jax.numpy as jnp
from jax import lax
from jax.experimental import pallas as pl
from jax.experimental.pallas import tpu as pltpu


BATCH_TILE = 8      # sublane-aligned batch tile processed per grid step
GATE_LANES = 128    # per-gate lane padding (H=32 -> padded to 128 lanes)


def lstm_relu_kernel(x_ref, wih_ref, whh_ref, b_ref, out_ref, gx_ref):
    """One batch tile: full-sequence LSTM + double ReLU on the final h.

    x_ref:   (1, T*BT, F)  rows ordered t*BT + b_local (time-major within tile)
    wih_ref: (F, 4*Hp)     gate-padded, zero in padded columns
    whh_ref: (Hp, 4*Hp)    gate-padded, zero in padded rows/columns
    b_ref:   (1, 4*Hp)     b_ih + b_hh, gate-padded with zeros
    out_ref: (BT, Hp)
    gx_ref:  (T*BT, 4*Hp)  VMEM scratch holding the hoisted input projection
    """
    BT, Hp = out_ref.shape
    T = x_ref.shape[1] // BT

    # Hoisted input projection + bias for ALL timesteps: one MXU matmul,
    # one bias broadcast (not T of each on the recurrent critical path).
    gx_ref[...] = (
        jnp.dot(x_ref[0], wih_ref[...], preferred_element_type=jnp.float32)
        + b_ref[...]
    )

    # Recurrent state lives in vregs (no VMEM round-trip per step).
    h = jnp.zeros((BT, Hp), jnp.float32)
    c = jnp.zeros((BT, Hp), jnp.float32)

    # T is small and static -> fully unroll so the LLO scheduler can interleave
    # the EUP sigmoid/tanh of step t with the MXU work of step t+1.
    for t in range(T):
        gates = gx_ref[t * BT:(t + 1) * BT, :] + jnp.dot(
            h, whh_ref[...], preferred_element_type=jnp.float32
        )  # (BT, 4*Hp), gate order [i, f, g, o], each gate 128-lane aligned
        i_g = jax.nn.sigmoid(gates[:, 0 * Hp:1 * Hp])
        f_g = jax.nn.sigmoid(gates[:, 1 * Hp:2 * Hp])
        g_g = jnp.tanh(gates[:, 2 * Hp:3 * Hp])
        o_g = jax.nn.sigmoid(gates[:, 3 * Hp:4 * Hp])
        c = f_g * c + i_g * g_g
        h = o_g * jnp.tanh(c)

    # linear1 / linear2 in the module are bare ReLU (see header): apply twice.
    out_ref[...] = jnp.maximum(jnp.maximum(h, 0.0), 0.0)


def prepare_params(params, hidden_units):
    """One-time weight prep: transpose + per-gate zero-pad to 128 lanes."""
    H = hidden_units
    Hp = max(GATE_LANES, ((H + GATE_LANES - 1) // GATE_LANES) * GATE_LANES)
    F = params["w_ih"].shape[1]

    w_ih = params["w_ih"].astype(jnp.float32)            # (4H, F) PyTorch layout
    w_hh = params["w_hh"].astype(jnp.float32)            # (4H, H)
    b = (params["b_ih"] + params["b_hh"]).astype(jnp.float32)  # (4H,)

    wih_p = jnp.zeros((F, 4 * Hp), jnp.float32)
    whh_p = jnp.zeros((Hp, 4 * Hp), jnp.float32)
    b_p = jnp.zeros((1, 4 * Hp), jnp.float32)
    for g in range(4):  # gate order [i, f, g, o]
        wih_p = wih_p.at[:, g * Hp:g * Hp + H].set(w_ih[g * H:(g + 1) * H, :].T)
        whh_p = whh_p.at[:H, g * Hp:g * Hp + H].set(w_hh[g * H:(g + 1) * H, :].T)
        b_p = b_p.at[0, g * Hp:g * Hp + H].set(b[g * H:(g + 1) * H])
    return wih_p, whh_p, b_p


@functools.partial(jax.jit, static_argnames=("hidden_units",))
def shallow_regression_lstm_forward(x, wih_p, whh_p, b_p, *, hidden_units):
    """x: (B, T, F) float32, batch_first as in the PyTorch module."""
    B, T, F = x.shape
    Hp = whh_p.shape[0]
    BT = BATCH_TILE
    n_tiles = pl.cdiv(B, BT)
    Bp = n_tiles * BT

    # Pad batch to a multiple of the 8-row sublane tile and regroup each batch
    # tile into a time-major (T*BT, F) slab: row index = t*BT + b_local.
    x_p = jnp.zeros((Bp, T, F), jnp.float32).at[:B].set(x.astype(jnp.float32))
    x_g = (x_p.reshape(n_tiles, BT, T, F)
               .transpose(0, 2, 1, 3)
               .reshape(n_tiles, T * BT, F))

    # TODO(synk): for long sequences on v7x (64 MiB VMEM), tile the time axis
    # with a BlockSpec ("arbitrary" axis, state in scratch) instead of keeping
    # the whole (T*BT, F) slab resident.
    out = pl.pallas_call(
        lstm_relu_kernel,
        out_shape=jax.ShapeDtypeStruct((Bp, Hp), jnp.float32),
        grid_spec=pltpu.PrefetchScalarGridSpec(
            num_scalar_prefetch=0,
            grid=(n_tiles,),
            in_specs=[
                pl.BlockSpec((1, T * BT, F), lambda i: (i, 0, 0)),
                pl.BlockSpec((F, 4 * Hp), lambda i: (0, 0)),
                pl.BlockSpec((Hp, 4 * Hp), lambda i: (0, 0)),
                pl.BlockSpec((1, 4 * Hp), lambda i: (0, 0)),
            ],
            out_specs=pl.BlockSpec((BT, Hp), lambda i: (i, 0)),
            scratch_shapes=[pltpu.VMEM((T * BT, 4 * Hp), jnp.float32)],
        ),
        compiler_params=pltpu.CompilerParams(
            dimension_semantics=("parallel",),   # batch tiles are independent
        ),
    )(x_g, wih_p, whh_p, b_p)

    return out[:B, :hidden_units]


def init_params(key, num_features, hidden_units):
    """Deterministic init matching PyTorch LSTM param shapes (uniform ±1/sqrt(H))."""
    k1, k2, k3, k4 = jax.random.split(key, 4)
    bound = 1.0 / jnp.sqrt(hidden_units)
    return {
        "w_ih": jax.random.uniform(k1, (4 * hidden_units, num_features),
                                   jnp.float32, -bound, bound),
        "w_hh": jax.random.uniform(k2, (4 * hidden_units, hidden_units),
                                   jnp.float32, -bound, bound),
        "b_ih": jax.random.uniform(k3, (4 * hidden_units,),
                                   jnp.float32, -bound, bound),
        "b_hh": jax.random.uniform(k4, (4 * hidden_units,),
                                   jnp.float32, -bound, bound),
    }
    # lstm2 / the never-applied Linear(hidden,256) / Linear(256,4) weights are
    # intentionally not created: they do not participate in forward().


def reference_forward(x, params):
    """Pure-JAX reference for correctness checking."""
    B, T, F = x.shape
    H = params["w_hh"].shape[1]
    w_ih_t = params["w_ih"].T
    w_hh_t = params["w_hh"].T
    b = params["b_ih"] + params["b_hh"]

    def step(carry, x_t):
        h, c = carry
        gates = x_t @ w_ih_t + h @ w_hh_t + b
        i = jax.nn.sigmoid(gates[:, 0 * H:1 * H])
        f = jax.nn.sigmoid(gates[:, 1 * H:2 * H])
        g = jnp.tanh(gates[:, 2 * H:3 * H])
        o = jax.nn.sigmoid(gates[:, 3 * H:4 * H])
        c = f * c + i * g
        h = o * jnp.tanh(c)
        return (h, c), None

    h0 = jnp.zeros((B, H), jnp.float32)
    c0 = jnp.zeros((B, H), jnp.float32)
    (hT, _), _ = lax.scan(step, (h0, c0), jnp.transpose(x, (1, 0, 2)))
    return jnp.maximum(jnp.maximum(hT, 0.0), 0.0)


if __name__ == "__main__":
    num_features = 4
    hidden_units = 32
    batch = 2
    seq = 8

    key = jax.random.PRNGKey(0)
    pkey, xkey = jax.random.split(key)
    params = init_params(pkey, num_features, hidden_units)
    x = jax.random.normal(xkey, (batch, seq, num_features), jnp.float32)

    wih_p, whh_p, b_p = prepare_params(params, hidden_units)
    out = shallow_regression_lstm_forward(x, wih_p, whh_p, b_p,
                                          hidden_units=hidden_units)
    out = jax.block_until_ready(out)

    ref = reference_forward(x, params)
    assert out.shape == (batch, hidden_units)
    # Padding only adds exact zeros to the contractions, so tolerance stays tight.
    assert jnp.allclose(out, ref, atol=1e-4, rtol=1e-4), "mismatch vs JAX reference"

    print("KERNEL_OK")
</pallas_src>

<mosaic_0001>
module attributes {stable_mosaic.version = 11 : i64} {
  func.func @lstm_relu_kernel(%arg0: i32, %arg1: memref<1x64x4xf32, #tpu.memory_space<vmem>>, %arg2: memref<4x512xf32, #tpu.memory_space<vmem>>, %arg3: memref<128x512xf32, #tpu.memory_space<vmem>>, %arg4: memref<1x512xf32, #tpu.memory_space<vmem>>, %arg5: memref<8x128xf32, #tpu.memory_space<vmem>>, %arg6: memref<64x512xf32, #tpu.memory_space<vmem>>) attributes {dimension_semantics = [#tpu.dimension_semantics<parallel>], iteration_bounds = array<i64: 1>, scalar_prefetch = 0 : i64, scratch_operands = 1 : i64, tpu.core_type = #tpu.core_type<tc>, window_params = [{transform_indices = @transform_0, window_bounds = array<i64: 1, 64, 4>}, {pipeline_mode = #tpu.pipeline_mode<synchronous>, transform_indices = @transform_1, window_bounds = array<i64: 4, 512>}, {pipeline_mode = #tpu.pipeline_mode<synchronous>, transform_indices = @transform_2, window_bounds = array<i64: 128, 512>}, {pipeline_mode = #tpu.pipeline_mode<synchronous>, transform_indices = @transform_3, window_bounds = array<i64: 1, 512>}, {transform_indices = @transform_4, window_bounds = array<i64: 8, 128>}]} {
    %c0 = arith.constant 0 : index
    %c0_0 = arith.constant 0 : index
    %c0_1 = arith.constant 0 : index
    %0 = vector.load %arg1[%c0, %c0_0, %c0_1] : memref<1x64x4xf32, #tpu.memory_space<vmem>>, vector<1x64x4xf32>
    %1 = vector.shape_cast %0 : vector<1x64x4xf32> to vector<64x4xf32>
    %c0_2 = arith.constant 0 : index
    %c0_3 = arith.constant 0 : index
    %2 = vector.load %arg2[%c0_2, %c0_3] : memref<4x512xf32, #tpu.memory_space<vmem>>, vector<4x512xf32>
    %cst = arith.constant dense<0.000000e+00> : vector<64x512xf32>
    %3 = tpu.matmul %1, %2, %cst {dimension_numbers = #tpu.dot_dimension_numbers<[1], [0], [0], [1], [0, 0, 1, 1], [], []>} : vector<64x4xf32>, vector<4x512xf32>, vector<64x512xf32> -> vector<64x512xf32>
    %c0_4 = arith.constant 0 : index
    %c0_5 = arith.constant 0 : index
    %4 = vector.load %arg4[%c0_4, %c0_5] : memref<1x512xf32, #tpu.memory_space<vmem>>, vector<1x512xf32>
    %5 = vector.broadcast %4 : vector<1x512xf32> to vector<64x512xf32>
    %6 = arith.addf %3, %5 : vector<64x512xf32>
    %c0_6 = arith.constant 0 : index
    %c0_7 = arith.constant 0 : index
    %7 = vector.load %arg6[%c0_6, %c0_7] : memref<64x512xf32, #tpu.memory_space<vmem>>, vector<64x512xf32>
    tpu.vector_store %arg6[%c0_6, %c0_7], %6 {strides = array<i32>} : memref<64x512xf32, #tpu.memory_space<vmem>>, vector<64x512xf32>,
    %cst_8 = arith.constant 0.000000e+00 : f32
    %8 = vector.broadcast %cst_8 : f32 to vector<8x128xf32>
    %cst_9 = arith.constant 0.000000e+00 : f32
    %9 = vector.broadcast %cst_9 : f32 to vector<8x128xf32>
    %c0_10 = arith.constant 0 : index
    %c0_11 = arith.constant 0 : index
    %10 = vector.load %arg6[%c0_10, %c0_11] : memref<64x512xf32, #tpu.memory_space<vmem>>, vector<8x512xf32>
    %c0_12 = arith.constant 0 : index
    %c0_13 = arith.constant 0 : index
    %11 = vector.load %arg3[%c0_12, %c0_13] : memref<128x512xf32, #tpu.memory_space<vmem>>, vector<128x512xf32>
    %cst_14 = arith.constant dense<0.000000e+00> : vector<8x512xf32>
    %12 = tpu.matmul %8, %11, %cst_14 {dimension_numbers = #tpu.dot_dimension_numbers<[1], [0], [0], [1], [0, 0, 1, 1], [], []>} : vector<8x128xf32>, vector<128x512xf32>, vector<8x512xf32> -> vector<8x512xf32>
    %13 = arith.addf %10, %12 : vector<8x512xf32>
    %14 = vector.extract_strided_slice %13 {offsets = [0, 0], sizes = [8, 128], strides = [1, 1]} : vector<8x512xf32> to vector<8x128xf32>
    %15 = arith.negf %14 : vector<8x128xf32>
    %16 = math.exp %15 : vector<8x128xf32>
    %cst_15 = arith.constant 1.000000e+00 : f32
    %17 = vector.broadcast %cst_15 : f32 to vector<8x128xf32>
    %18 = arith.addf %17, %16 : vector<8x128xf32>
    %19 = arith.divf %17, %18 : vector<8x128xf32>
    %20 = vector.extract_strided_slice %13 {offsets = [0, 128], sizes = [8, 128], strides = [1, 1]} : vector<8x512xf32> to vector<8x128xf32>
    %21 = arith.negf %20 : vector<8x128xf32>
    %22 = math.exp %21 : vector<8x128xf32>
    %cst_16 = arith.constant 1.000000e+00 : f32
    %23 = vector.broadcast %cst_16 : f32 to vector<8x128xf32>
    %24 = arith.addf %23, %22 : vector<8x128xf32>
    %25 = arith.divf %23, %24 : vector<8x128xf32>
    %26 = vector.extract_strided_slice %13 {offsets = [0, 256], sizes = [8, 128], strides = [1, 1]} : vector<8x512xf32> to vector<8x128xf32>
    %27 = math.tanh %26 : vector<8x128xf32>
    %28 = vector.extract_strided_slice %13 {offsets = [0, 384], sizes = [8, 128], strides = [1, 1]} : vector<8x512xf32> to vector<8x128xf32>
    %29 = arith.negf %28 : vector<8x128xf32>
    %30 = math.exp %29 : vector<8x128xf32>
    %cst_17 = arith.constant 1.000000e+00 : f32
    %31 = vector.broadcast %cst_17 : f32 to vector<8x128xf32>
    %32 = arith.addf %31, %30 : vector<8x128xf32>
    %33 = arith.divf %31, %32 : vector<8x128xf32>
    %34 = arith.mulf %25, %9 : vector<8x128xf32>
    %35 = arith.mulf %19, %27 : vector<8x128xf32>
    %36 = arith.addf %34, %35 : vector<8x128xf32>
    %37 = math.tanh %36 : vector<8x128xf32>
    %38 = arith.mulf %33, %37 : vector<8x128xf32>
    %c8 = arith.constant 8 : index
    %c0_18 = arith.constant 0 : index
    %39 = vector.load %arg6[%c8, %c0_18] : memref<64x512xf32, #tpu.memory_space<vmem>>, vector<8x512xf32>
    %c0_19 = arith.constant 0 : index
    %c0_20 = arith.constant 0 : index
    %40 = vector.load %arg3[%c0_19, %c0_20] : memref<128x512xf32, #tpu.memory_space<vmem>>, vector<128x512xf32>
    %cst_21 = arith.constant dense<0.000000e+00> : vector<8x512xf32>
    %41 = tpu.matmul %38, %40, %cst_21 {dimension_numbers = #tpu.dot_dimension_numbers<[1], [0], [0], [1], [0, 0, 1, 1], [], []>} : vector<8x128xf32>, vector<128x512xf32>, vector<8x512xf32> -> vector<8x512xf32>
    %42 = arith.addf %39, %41 : vector<8x512xf32>
    %43 = vector.extract_strided_slice %42 {offsets = [0, 0], sizes = [8, 128], strides = [1, 1]} : vector<8x512xf32> to vector<8x128xf32>
    %44 = arith.negf %43 : vector<8x128xf32>
    %45 = math.exp %44 : vector<8x128xf32>
    %cst_22 = arith.constant 1.000000e+00 : f32
    %46 = vector.broadcast %cst_22 : f32 to vector<8x128xf32>
    %47 = arith.addf %46, %45 : vector<8x128xf32>
    %48 = arith.divf %46, %47 : vector<8x128xf32>
    %49 = vector.extract_strided_slice %42 {offsets = [0, 128], sizes = [8, 128], strides = [1, 1]} : vector<8x512xf32> to vector<8x128xf32>
    %50 = arith.negf %49 : vector<8x128xf32>
    %51 = math.exp %50 : vector<8x128xf32>
    %cst_23 = arith.constant 1.000000e+00 : f32
    %52 = vector.broadcast %cst_23 : f32 to vector<8x128xf32>
    %53 = arith.addf %52, %51 : vector<8x128xf32>
    %54 = arith.divf %52, %53 : vector<8x128xf32>
    %55 = vector.extract_strided_slice %42 {offsets = [0, 256], sizes = [8, 128], strides = [1, 1]} : vector<8x512xf32> to vector<8x128xf32>
    %56 = math.tanh %55 : vector<8x128xf32>
    %57 = vector.extract_strided_slice %42 {offsets = [0, 384], sizes = [8, 128], strides = [1, 1]} : vector<8x512xf32> to vector<8x128xf32>
    %58 = arith.negf %57 : vector<8x128xf32>
    %59 = math.exp %58 : vector<8x128xf32>
    %cst_24 = arith.constant 1.000000e+00 : f32
    %60 = vector.broadcast %cst_24 : f32 to vector<8x128xf32>
    %61 = arith.addf %60, %59 : vector<8x128xf32>
    %62 = arith.divf %60, %61 : vector<8x128xf32>
    %63 = arith.mulf %54, %36 : vector<8x128xf32>
    %64 = arith.mulf %48, %56 : vector<8x128xf32>
    %65 = arith.addf %63, %64 : vector<8x128xf32>
    %66 = math.tanh %65 : vector<8x128xf32>
    %67 = arith.mulf %62, %66 : vector<8x128xf32>
    %c16 = arith.constant 16 : index
    %c0_25 = arith.constant 0 : index
    %68 = vector.load %arg6[%c16, %c0_25] : memref<64x512xf32, #tpu.memory_space<vmem>>, vector<8x512xf32>
    %c0_26 = arith.constant 0 : index
    %c0_27 = arith.constant 0 : index
    %69 = vector.load %arg3[%c0_26, %c0_27] : memref<128x512xf32, #tpu.memory_space<vmem>>, vector<128x512xf32>
    %cst_28 = arith.constant dense<0.000000e+00> : vector<8x512xf32>
    %70 = tpu.matmul %67, %69, %cst_28 {dimension_numbers = #tpu.dot_dimension_numbers<[1], [0], [0], [1], [0, 0, 1, 1], [], []>} : vector<8x128xf32>, vector<128x512xf32>, vector<8x512xf32> -> vector<8x512xf32>
    %71 = arith.addf %68, %70 : vector<8x512xf32>
    %72 = vector.extract_strided_slice %71 {offsets = [0, 0], sizes = [8, 128], strides = [1, 1]} : vector<8x512xf32> to vector<8x128xf32>
    %73 = arith.negf %72 : vector<8x128xf32>
    %74 = math.exp %73 : vector<8x128xf32>
    %cst_29 = arith.constant 1.000000e+00 : f32
    %75 = vector.broadcast %cst_29 : f32 to vector<8x128xf32>
    %76 = arith.addf %75, %74 : vector<8x128xf32>
    %77 = arith.divf %75, %76 : vector<8x128xf32>
    %78 = vector.extract_strided_slice %71 {offsets = [0, 128], sizes = [8, 128], strides = [1, 1]} : vector<8x512xf32> to vector<8x128xf32>
    %79 = arith.negf %78 : vector<8x128xf32>
    %80 = math.exp %79 : vector<8x128xf32>
    %cst_30 = arith.constant 1.000000e+00 : f32
    %81 = vector.broadcast %cst_30 : f32 to vector<8x128xf32>
    %82 = arith.addf %81, %80 : vector<8x128xf32>
    %83 = arith.divf %81, %82 : vector<8x128xf32>
    %84 = vector.extract_strided_slice %71 {offsets = [0, 256], sizes = [8, 128], strides = [1, 1]} : vector<8x512xf32> to vector<8x128xf32>
    %85 = math.tanh %84 : vector<8x128xf32>
    %86 = vector.extract_strided_slice %71 {offsets = [0, 384], sizes = [8, 128], strides = [1, 1]} : vector<8x512xf32> to vector<8x128xf32>
    %87 = arith.negf %86 : vector<8x128xf32>
    %88 = math.exp %87 : vector<8x128xf32>
    %cst_31 = arith.constant 1.000000e+00 : f32
    %89 = vector.broadcast %cst_31 : f32 to vector<8x128xf32>
    %90 = arith.addf %89, %88 : vector<8x128xf32>
    %91 = arith.divf %89, %90 : vector<8x128xf32>
    %92 = arith.mulf %83, %65 : vector<8x128xf32>
    %93 = arith.mulf %77, %85 : vector<8x128xf32>
    %94 = arith.addf %92, %93 : vector<8x128xf32>
    %95 = math.tanh %94 : vector<8x128xf32>
    %96 = arith.mulf %91, %95 : vector<8x128xf32>
    %c24 = arith.constant 24 : index
    %c0_32 = arith.constant 0 : index
    %97 = vector.load %arg6[%c24, %c0_32] : memref<64x512xf32, #tpu.memory_space<vmem>>, vector<8x512xf32>
    %c0_33 = arith.constant 0 : index
    %c0_34 = arith.constant 0 : index
    %98 = vector.load %arg3[%c0_33, %c0_34] : memref<128x512xf32, #tpu.memory_space<vmem>>, vector<128x512xf32>
    %cst_35 = arith.constant dense<0.000000e+00> : vector<8x512xf32>
    %99 = tpu.matmul %96, %98, %cst_35 {dimension_numbers = #tpu.dot_dimension_numbers<[1], [0], [0], [1], [0, 0, 1, 1], [], []>} : vector<8x128xf32>, vector<128x512xf32>, vector<8x512xf32> -> vector<8x512xf32>
    %100 = arith.addf %97, %99 : vector<8x512xf32>
    %101 = vector.extract_strided_slice %100 {offsets = [0, 0], sizes = [8, 128], strides = [1, 1]} : vector<8x512xf32> to vector<8x128xf32>
    %102 = arith.negf %101 : vector<8x128xf32>
    %103 = math.exp %102 : vector<8x128xf32>
    %cst_36 = arith.constant 1.000000e+00 : f32
    %104 = vector.broadcast %cst_36 : f32 to vector<8x128xf32>
    %105 = arith.addf %104, %103 : vector<8x128xf32>
    %106 = arith.divf %104, %105 : vector<8x128xf32>
    %107 = vector.extract_strided_slice %100 {offsets = [0, 128], sizes = [8, 128], strides = [1, 1]} : vector<8x512xf32> to vector<8x128xf32>
    %108 = arith.negf %107 : vector<8x128xf32>
    %109 = math.exp %108 : vector<8x128xf32>
    %cst_37 = arith.constant 1.000000e+00 : f32
    %110 = vector.broadcast %cst_37 : f32 to vector<8x128xf32>
    %111 = arith.addf %110, %109 : vector<8x128xf32>
    %112 = arith.divf %110, %111 : vector<8x128xf32>
    %113 = vector.extract_strided_slice %100 {offsets = [0, 256], sizes = [8, 128], strides = [1, 1]} : vector<8x512xf32> to vector<8x128xf32>
    %114 = math.tanh %113 : vector<8x128xf32>
    %115 = vector.extract_strided_slice %100 {offsets = [0, 384], sizes = [8, 128], strides = [1, 1]} : vector<8x512xf32> to vector<8x128xf32>
    %116 = arith.negf %115 : vector<8x128xf32>
    %117 = math.exp %116 : vector<8x128xf32>
    %cst_38 = arith.constant 1.000000e+00 : f32
    %118 = vector.broadcast %cst_38 : f32 to vector<8x128xf32>
    %119 = arith.addf %118, %117 : vector<8x128xf32>
    %120 = arith.divf %118, %119 : vector<8x128xf32>
    %121 = arith.mulf %112, %94 : vector<8x128xf32>
    %122 = arith.mulf %106, %114 : vector<8x128xf32>
    %123 = arith.addf %121, %122 : vector<8x128xf32>
    %124 = math.tanh %123 : vector<8x128xf32>
    %125 = arith.mulf %120, %124 : vector<8x128xf32>
    %c32 = arith.constant 32 : index
    %c0_39 = arith.constant 0 : index
    %126 = vector.load %arg6[%c32, %c0_39] : memref<64x512xf32, #tpu.memory_space<vmem>>, vector<8x512xf32>
    %c0_40 = arith.constant 0 : index
    %c0_41 = arith.constant 0 : index
    %127 = vector.load %arg3[%c0_40, %c0_41] : memref<128x512xf32, #tpu.memory_space<vmem>>, vector<128x512xf32>
    %cst_42 = arith.constant dense<0.000000e+00> : vector<8x512xf32>
    %128 = tpu.matmul %125, %127, %cst_42 {dimension_numbers = #tpu.dot_dimension_numbers<[1], [0], [0], [1], [0, 0, 1, 1], [], []>} : vector<8x128xf32>, vector<128x512xf32>, vector<8x512xf32> -> vector<8x512xf32>
    %129 = arith.addf %126, %128 : vector<8x512xf32>
    %130 = vector.extract_strided_slice %129 {offsets = [0, 0], sizes = [8, 128], strides = [1, 1]} : vector<8x512xf32> to vector<8x128xf32>
    %131 = arith.negf %130 : vector<8x128xf32>
    %132 = math.exp %131 : vector<8x128xf32>
    %cst_43 = arith.constant 1.000000e+00 : f32
    %133 = vector.broadcast %cst_43 : f32 to vector<8x128xf32>
    %134 = arith.addf %133, %132 : vector<8x128xf32>
    %135 = arith.divf %133, %134 : vector<8x128xf32>
    %136 = vector.extract_strided_slice %129 {offsets = [0, 128], sizes = [8, 128], strides = [1, 1]} : vector<8x512xf32> to vector<8x128xf32>
    %137 = arith.negf %136 : vector<8x128xf32>
    %138 = math.exp %137 : vector<8x128xf32>
    %cst_44 = arith.constant 1.000000e+00 : f32
    %139 = vector.broadcast %cst_44 : f32 to vector<8x128xf32>
    %140 = arith.addf %139, %138 : vector<8x128xf32>
    %141 = arith.divf %139, %140 : vector<8x128xf32>
    %142 = vector.extract_strided_slice %129 {offsets = [0, 256], sizes = [8, 128], strides = [1, 1]} : vector<8x512xf32> to vector<8x128xf32>
    %143 = math.tanh %142 : vector<8x128xf32>
    %144 = vector.extract_strided_slice %129 {offsets = [0, 384], sizes = [8, 128], strides = [1, 1]} : vector<8x512xf32> to vector<8x128xf32>
    %145 = arith.negf %144 : vector<8x128xf32>
    %146 = math.exp %145 : vector<8x128xf32>
    %cst_45 = arith.constant 1.000000e+00 : f32
    %147 = vector.broadcast %cst_45 : f32 to vector<8x128xf32>
    %148 = arith.addf %147, %146 : vector<8x128xf32>
    %149 = arith.divf %147, %148 : vector<8x128xf32>
    %150 = arith.mulf %141, %123 : vector<8x128xf32>
    %151 = arith.mulf %135, %143 : vector<8x128xf32>
    %152 = arith.addf %150, %151 : vector<8x128xf32>
    %153 = math.tanh %152 : vector<8x128xf32>
    %154 = arith.mulf %149, %153 : vector<8x128xf32>
    %c40 = arith.constant 40 : index
    %c0_46 = arith.constant 0 : index
    %155 = vector.load %arg6[%c40, %c0_46] : memref<64x512xf32, #tpu.memory_space<vmem>>, vector<8x512xf32>
    %c0_47 = arith.constant 0 : index
    %c0_48 = arith.constant 0 : index
    %156 = vector.load %arg3[%c0_47, %c0_48] : memref<128x512xf32, #tpu.memory_space<vmem>>, vector<128x512xf32>
    %cst_49 = arith.constant dense<0.000000e+00> : vector<8x512xf32>
    %157 = tpu.matmul %154, %156, %cst_49 {dimension_numbers = #tpu.dot_dimension_numbers<[1], [0], [0], [1], [0, 0, 1, 1], [], []>} : vector<8x128xf32>, vector<128x512xf32>, vector<8x512xf32> -> vector<8x512xf32>
    %158 = arith.addf %155, %157 : vector<8x512xf32>
    %159 = vector.extract_strided_slice %158 {offsets = [0, 0], sizes = [8, 128], strides = [1, 1]} : vector<8x512xf32> to vector<8x128xf32>
    %160 = arith.negf %159 : vector<8x128xf32>
    %161 = math.exp %160 : vector<8x128xf32>
    %cst_50 = arith.constant 1.000000e+00 : f32
    %162 = vector.broadcast %cst_50 : f32 to vector<8x128xf32>
    %163 = arith.addf %162, %161 : vector<8x128xf32>
    %164 = arith.divf %162, %163 : vector<8x128xf32>
    %165 = vector.extract_strided_slice %158 {offsets = [0, 128], sizes = [8, 128], strides = [1, 1]} : vector<8x512xf32> to vector<8x128xf32>
    %166 = arith.negf %165 : vector<8x128xf32>
    %167 = math.exp %166 : vector<8x128xf32>
    %cst_51 = arith.constant 1.000000e+00 : f32
    %168 = vector.broadcast %cst_51 : f32 to vector<8x128xf32>
    %169 = arith.addf %168, %167 : vector<8x128xf32>
    %170 = arith.divf %168, %169 : vector<8x128xf32>
    %171 = vector.extract_strided_slice %158 {offsets = [0, 256], sizes = [8, 128], strides = [1, 1]} : vector<8x512xf32> to vector<8x128xf32>
    %172 = math.tanh %171 : vector<8x128xf32>
    %173 = vector.extract_strided_slice %158 {offsets = [0, 384], sizes = [8, 128], strides = [1, 1]} : vector<8x512xf32> to vector<8x128xf32>
    %174 = arith.negf %173 : vector<8x128xf32>
    %175 = math.exp %174 : vector<8x128xf32>
    %cst_52 = arith.constant 1.000000e+00 : f32
    %176 = vector.broadcast %cst_52 : f32 to vector<8x128xf32>
    %177 = arith.addf %176, %175 : vector<8x128xf32>
    %178 = arith.divf %176, %177 : vector<8x128xf32>
    %179 = arith.mulf %170, %152 : vector<8x128xf32>
    %180 = arith.mulf %164, %172 : vector<8x128xf32>
    %181 = arith.addf %179, %180 : vector<8x128xf32>
    %182 = math.tanh %181 : vector<8x128xf32>
    %183 = arith.mulf %178, %182 : vector<8x128xf32>
    %c48 = arith.constant 48 : index
    %c0_53 = arith.constant 0 : index
    %184 = vector.load %arg6[%c48, %c0_53] : memref<64x512xf32, #tpu.memory_space<vmem>>, vector<8x512xf32>
    %c0_54 = arith.constant 0 : index
    %c0_55 = arith.constant 0 : index
    %185 = vector.load %arg3[%c0_54, %c0_55] : memref<128x512xf32, #tpu.memory_space<vmem>>, vector<128x512xf32>
    %cst_56 = arith.constant dense<0.000000e+00> : vector<8x512xf32>
    %186 = tpu.matmul %183, %185, %cst_56 {dimension_numbers = #tpu.dot_dimension_numbers<[1], [0], [0], [1], [0, 0, 1, 1], [], []>} : vector<8x128xf32>, vector<128x512xf32>, vector<8x512xf32> -> vector<8x512xf32>
    %187 = arith.addf %184, %186 : vector<8x512xf32>
    %188 = vector.extract_strided_slice %187 {offsets = [0, 0], sizes = [8, 128], strides = [1, 1]} : vector<8x512xf32> to vector<8x128xf32>
    %189 = arith.negf %188 : vector<8x128xf32>
    %190 = math.exp %189 : vector<8x128xf32>
    %cst_57 = arith.constant 1.000000e+00 : f32
    %191 = vector.broadcast %cst_57 : f32 to vector<8x128xf32>
    %192 = arith.addf %191, %190 : vector<8x128xf32>
    %193 = arith.divf %191, %192 : vector<8x128xf32>
    %194 = vector.extract_strided_slice %187 {offsets = [0, 128], sizes = [8, 128], strides = [1, 1]} : vector<8x512xf32> to vector<8x128xf32>
    %195 = arith.negf %194 : vector<8x128xf32>
    %196 = math.exp %195 : vector<8x128xf32>
    %cst_58 = arith.constant 1.000000e+00 : f32
    %197 = vector.broadcast %cst_58 : f32 to vector<8x128xf32>
    %198 = arith.addf %197, %196 : vector<8x128xf32>
    %199 = arith.divf %197, %198 : vector<8x128xf32>
    %200 = vector.extract_strided_slice %187 {offsets = [0, 256], sizes = [8, 128], strides = [1, 1]} : vector<8x512xf32> to vector<8x128xf32>
    %201 = math.tanh %200 : vector<8x128xf32>
    %202 = vector.extract_strided_slice %187 {offsets = [0, 384], sizes = [8, 128], strides = [1, 1]} : vector<8x512xf32> to vector<8x128xf32>
    %203 = arith.negf %202 : vector<8x128xf32>
    %204 = math.exp %203 : vector<8x128xf32>
    %cst_59 = arith.constant 1.000000e+00 : f32
    %205 = vector.broadcast %cst_59 : f32 to vector<8x128xf32>
    %206 = arith.addf %205, %204 : vector<8x128xf32>
    %207 = arith.divf %205, %206 : vector<8x128xf32>
    %208 = arith.mulf %199, %181 : vector<8x128xf32>
    %209 = arith.mulf %193, %201 : vector<8x128xf32>
    %210 = arith.addf %208, %209 : vector<8x128xf32>
    %211 = math.tanh %210 : vector<8x128xf32>
    %212 = arith.mulf %207, %211 : vector<8x128xf32>
    %c56 = arith.constant 56 : index
    %c0_60 = arith.constant 0 : index
    %213 = vector.load %arg6[%c56, %c0_60] : memref<64x512xf32, #tpu.memory_space<vmem>>, vector<8x512xf32>
    %c0_61 = arith.constant 0 : index
    %c0_62 = arith.constant 0 : index
    %214 = vector.load %arg3[%c0_61, %c0_62] : memref<128x512xf32, #tpu.memory_space<vmem>>, vector<128x512xf32>
    %cst_63 = arith.constant dense<0.000000e+00> : vector<8x512xf32>
    %215 = tpu.matmul %212, %214, %cst_63 {dimension_numbers = #tpu.dot_dimension_numbers<[1], [0], [0], [1], [0, 0, 1, 1], [], []>} : vector<8x128xf32>, vector<128x512xf32>, vector<8x512xf32> -> vector<8x512xf32>
    %216 = arith.addf %213, %215 : vector<8x512xf32>
    %217 = vector.extract_strided_slice %216 {offsets = [0, 0], sizes = [8, 128], strides = [1, 1]} : vector<8x512xf32> to vector<8x128xf32>
    %218 = arith.negf %217 : vector<8x128xf32>
    %219 = math.exp %218 : vector<8x128xf32>
    %cst_64 = arith.constant 1.000000e+00 : f32
    %220 = vector.broadcast %cst_64 : f32 to vector<8x128xf32>
    %221 = arith.addf %220, %219 : vector<8x128xf32>
    %222 = arith.divf %220, %221 : vector<8x128xf32>
    %223 = vector.extract_strided_slice %216 {offsets = [0, 128], sizes = [8, 128], strides = [1, 1]} : vector<8x512xf32> to vector<8x128xf32>
    %224 = arith.negf %223 : vector<8x128xf32>
    %225 = math.exp %224 : vector<8x128xf32>
    %cst_65 = arith.constant 1.000000e+00 : f32
    %226 = vector.broadcast %cst_65 : f32 to vector<8x128xf32>
    %227 = arith.addf %226, %225 : vector<8x128xf32>
    %228 = arith.divf %226, %227 : vector<8x128xf32>
    %229 = vector.extract_strided_slice %216 {offsets = [0, 256], sizes = [8, 128], strides = [1, 1]} : vector<8x512xf32> to vector<8x128xf32>
    %230 = math.tanh %229 : vector<8x128xf32>
    %231 = vector.extract_strided_slice %216 {offsets = [0, 384], sizes = [8, 128], strides = [1, 1]} : vector<8x512xf32> to vector<8x128xf32>
    %232 = arith.negf %231 : vector<8x128xf32>
    %233 = math.exp %232 : vector<8x128xf32>
    %cst_66 = arith.constant 1.000000e+00 : f32
    %234 = vector.broadcast %cst_66 : f32 to vector<8x128xf32>
    %235 = arith.addf %234, %233 : vector<8x128xf32>
    %236 = arith.divf %234, %235 : vector<8x128xf32>
    %237 = arith.mulf %228, %210 : vector<8x128xf32>
    %238 = arith.mulf %222, %230 : vector<8x128xf32>
    %239 = arith.addf %237, %238 : vector<8x128xf32>
    %240 = math.tanh %239 : vector<8x128xf32>
    %241 = arith.mulf %236, %240 : vector<8x128xf32>
    %cst_67 = arith.constant 0.000000e+00 : f32
    %242 = vector.broadcast %cst_67 : f32 to vector<8x128xf32>
    %243 = arith.maximumf %241, %242 : vector<8x128xf32>
    %cst_68 = arith.constant 0.000000e+00 : f32
    %244 = vector.broadcast %cst_68 : f32 to vector<8x128xf32>
    %245 = arith.maximumf %243, %244 : vector<8x128xf32>
    %c0_69 = arith.constant 0 : index
    %c0_70 = arith.constant 0 : index
    %246 = vector.load %arg5[%c0_69, %c0_70] : memref<8x128xf32, #tpu.memory_space<vmem>>, vector<8x128xf32>
    tpu.vector_store %arg5[%c0_69, %c0_70], %245 {strides = array<i32>} : memref<8x128xf32, #tpu.memory_space<vmem>>, vector<8x128xf32>,
    return
  }
  func.func @transform_0(%arg0: i32) -> (i32, i32, i32) {
    %c0_i32 = arith.constant 0 : i32
    %c0_i32_0 = arith.constant 0 : i32
    %c0_i32_1 = arith.constant 0 : i32
    return %arg0, %c0_i32, %c0_i32_0 : i32, i32, i32
  }
  func.func @transform_1(%arg0: i32) -> (i32, i32) {
    %c0_i32 = arith.constant 0 : i32
    %c0_i32_0 = arith.constant 0 : i32
    %c0_i32_1 = arith.constant 0 : i32
    return %c0_i32, %c0_i32_0 : i32, i32
  }
  func.func @transform_2(%arg0: i32) -> (i32, i32) {
    %c0_i32 = arith.constant 0 : i32
    %c0_i32_0 = arith.constant 0 : i32
    %c0_i32_1 = arith.constant 0 : i32
    return %c0_i32, %c0_i32_0 : i32, i32
  }
  func.func @transform_3(%arg0: i32) -> (i32, i32) {
    %c0_i32 = arith.constant 0 : i32
    %c0_i32_0 = arith.constant 0 : i32
    %c0_i32_1 = arith.constant 0 : i32
    return %c0_i32, %c0_i32_0 : i32, i32
  }
  func.func @transform_4(%arg0: i32) -> (i32, i32) {
    %c0_i32 = arith.constant 0 : i32
    %c0_i32_0 = arith.constant 0 : i32
    return %arg0, %c0_i32 : i32, i32
  }
}

</mosaic_0001>

<bundles_post_ra>
// kernel: shallow_regression_lstm_forward.1
= control target key start
LH: loop header
LB: loop body
LE: loop exit
PB: predicated region body
PF: predicated region fallthrough
CT: control target
= control target key end

     0   :  { %9 = vsyncpa [#allocation4], 0  ;;  %s2601_s15 = smov [#allocation3]   ;;  %s3116_s0 = inlined_call_operand.vmem [shape: f32[1,64,4], index: 0, kind: input, shape index: {}]   ;;  %s3117_s1 = inlined_call_operand.vmem [shape: f32[4,512], index: 1, kind: input, shape index: {}]   ;;  %s3118_s2 = inlined_call_operand.hbm [shape: f32[128,512], index: 2, kind: input, shape index: {}]   ;;  %s3119_s3 = inlined_call_operand.vmem [shape: f32[1,512], index: 3, kind: input, shape index: {}]   ;;  %s3120_s4 = inlined_call_operand.vmem [shape: f32[8,128], index: 4, kind: output, shape index: {}]  }
   0x1   :  { %s19_s16 = sshll.u32 %s2601_s15, 4  ;;  %s2577_s19 = scalar_lea.hbm %s3118_s2, 8192  ;;  %s20_s16 = int_to_ptr.vmem [resolvable:$true] %s19_s16 }
   0x2   :  { %p2578_p0 = scmp.ne.s32.totalorder %s3118_s2, %s2577_s19  ;;  %p2581_p1 = scmp.lt.u32.totalorder %s2577_s19, %s3118_s2 }
   0x4   :  { %p2583_p2 = pnand %p2581_p1, %p2578_p0 }
   0x6   :  { %2586 = shalt.err (!%p2583_p2)
}
   0x7   :  { %s2587_s24 = scalar_lea.vmem %s20_s16, 8192  ;;  %p2592_p4 = scmp.lt.s32.totalorder %s20_s16, %s20_s16 }
   0x8   :  { %p2588_p3 = scmp.ne.s32.totalorder %s20_s16, %s2587_s24  ;;  %p2593_p5 = scmp.lt.s32.totalorder %s2587_s24, %s2587_s24 }
   0xa   :  { %p2594_p6 = por %p2593_p5, %p2592_p4 }
   0xc   :  { %p2595_p7 = pnand %p2594_p6, %p2588_p3 }
   0xe   :  { %2598 = shalt.err (!%p2595_p7)
}
   0xf   :  { %s2602_s25 = smov 512   ;;  %s2603_s26 = smov 32  }
  0x10   :  { %25 = dma.hbm_to_vmem [thread:$0]  %s3118_s2, 8192, %s20_s16, [#allocation4], %s2602_s25, %s2602_s25, %s2603_s26  }
  0x11   :  { %2599 = dma.done.wait [#allocation4], 8192  }
  0x12   :  { %2600 = vsyncadd [#allocation4], 4294959104  ;;  %v2604_v0 = vmov 0.0   ;;  %v39_v1 = vld [vmem:[%s3117_s1] sm:$0xff]  ;;  %vm92_vm0 = vcmask 1043456   ;;  %v40_v2 = vld [vmem:[%s3117_s1 + $0x8] sm:$0xff] }
  0x13   :  { %165 = vmatprep.mubr.f32.mxu0 %v2604_v0  ;;  %278 = vmatprep.mubr.f32.mxu1 %v2604_v0  ;;  %v31_v3 = vld [vmem:[%s3116_s0] sm:$0xff]  ;;  %v65_v4 = vcombine.high %v39_v1, %v39_v1  ;;  %v66_v5 = vcombine.high %v40_v2, %v40_v2  ;;  %v364_v6 = vld [vmem:[#allocation3 + $0x8] sm:$0xff]  ;;  %v366_v8 = vld [vmem:[#allocation3 + $0x18] sm:$0xff]  ;;  %vm67_vm1 = vcmask 31744  }
  0x14   :  { %v368_v7 = vld [vmem:[#allocation3 + $0x28] sm:$0xff]  ;;  %v370_v10 = vld [vmem:[#allocation3 + $0x38] sm:$0xff]  ;;  %v363_v11 = vld [vmem:[#allocation3] sm:$0xff] }
  0x15   :  { %v2653_v9 = vpack.c.bf16 %v368_v7, %v364_v6  ;;  %v367_v12 = vld [vmem:[#allocation3 + $0x20] sm:$0xff]  ;;  %1823 = vmatprep.subr.msk.mxu0 %vm92_vm0, %v65_v4  ;;  %1833 = vmatprep.subr.msk.mxu1 %vm92_vm0, %v66_v5  ;;  %v2657_v13 = vpack.c.bf16 %v370_v10, %v366_v8  ;;  %v365_v15 = vld [vmem:[#allocation3 + $0x10] sm:$0xff]  ;;  %v372_v18 = vld [vmem:[#allocation3 + $0x48] sm:$0xff] }
  0x16   :  { %v2659_v14 = vpack.c.bf16 %v367_v12, %v363_v11  ;;  %v369_v16 = vld [vmem:[#allocation3 + $0x30] sm:$0xff]  ;;  %1824 = vmatpush1.msk.msra.mxu0 %vm92_vm0, %v39_v1  ;;  %1834 = vmatpush1.msk.msra.mxu1 %vm92_vm0, %v40_v2  ;;  %v376_v19 = vld [vmem:[#allocation3 + $0x68] sm:$0xff]  ;;  %v374_v20 = vld [vmem:[#allocation3 + $0x58] sm:$0xff] }
  0x17   :  { %v2663_v17 = vpack.c.bf16 %v369_v16, %v365_v15  ;;  %1825 = vmatmul.mubr.msk.f32.vlgmr.msra.gmra.mrb[0].mxu0 %vm67_vm1, %v31_v3  ;;  %1835 = vmatmul.mubr.msk.f32.vlgmr.msra.gmra.mrb[0].mxu1 %vm67_vm1, %v31_v3  ;;  %v378_v21 = vld [vmem:[#allocation3 + $0x78] sm:$0xff]  ;;  %v371_v22 = vld [vmem:[#allocation3 + $0x40] sm:$0xff]  ;;  %v32_v24 = vld [vmem:[%s3116_s0 + $0x8] sm:$0xff]  ;;  %v2672_v25 = vpack.c.bf16 %v376_v19, %v372_v18 }
  0x18   :  { %v375_v23 = vld [vmem:[#allocation3 + $0x60] sm:$0xff]  ;;  %1868 = vmatprep.subr.bf16.mxu0 %v2653_v9  ;;  %1900 = vmatprep.subr.bf16.mxu1 %v2657_v13  ;;  %v2674_v26 = vpack.c.bf16 %v378_v21, %v374_v20  ;;  %v373_v27 = vld [vmem:[#allocation3 + $0x50] sm:$0xff]  ;;  %v380_v31 = vld [vmem:[#allocation3 + $0x88] sm:$0xff] }
  0x19   :  { %v377_v28 = vld [vmem:[#allocation3 + $0x70] sm:$0xff]  ;;  %1870 = vmatpush1.bf16.msra.mxu0 %v2659_v14  ;;  %1902 = vmatpush1.bf16.msra.mxu1 %v2663_v17  ;;  %v2678_v29 = vpack.c.bf16 %v375_v23, %v371_v22  ;;  %v384_v32 = vld [vmem:[#allocation3 + $0xa8] sm:$0xff]  ;;  %v382_v33 = vld [vmem:[#allocation3 + $0x98] sm:$0xff] }
  0x1a   :  { %v2680_v30 = vpack.c.bf16 %v377_v28, %v373_v27  ;;  %171 = vmatprep.mubr.f32.mxu0 %v2604_v0  ;;  %284 = vmatprep.mubr.f32.mxu1 %v2604_v0  ;;  %v386_v34 = vld [vmem:[#allocation3 + $0xb8] sm:$0xff]  ;;  %v379_v35 = vld [vmem:[#allocation3 + $0x80] sm:$0xff]  ;;  %v381_v37 = vld [vmem:[#allocation3 + $0x90] sm:$0xff]  ;;  %v2691_v40 = vpack.c.bf16 %v384_v32, %v380_v31 }
  0x1b   :  { %v383_v36 = vld [vmem:[#allocation3 + $0xa0] sm:$0xff]  ;;  %1826 = vmatmul.mubr.msk.f32.gmra.mrb[2].mxu0 %vm67_vm1, %v32_v24  ;;  %1836 = vmatmul.mubr.msk.f32.gmra.mrb[2].mxu1 %vm67_vm1, %v32_v24  ;;  %v385_v38 = vld [vmem:[#allocation3 + $0xb0] sm:$0xff]  ;;  %v2693_v41 = vpack.c.bf16 %v386_v34, %v382_v33  ;;  %v388_v42 = vld [vmem:[#allocation3 + $0xc8] sm:$0xff] }
  0x1c   :  { %1872 = vmatprep.subr.bf16.mxu0 %v2672_v25  ;;  %1904 = vmatprep.subr.bf16.mxu1 %v2674_v26  ;;  %v33_v39 = vld [vmem:[%s3116_s0 + $0x10] sm:$0xff]  ;;  %v392_v43 = vld [vmem:[#allocation3 + $0xe8] sm:$0xff]  ;;  %v2697_v44 = vpack.c.bf16 %v383_v36, %v379_v35  ;;  %v2699_v45 = vpack.c.bf16 %v385_v38, %v381_v37  ;;  %v390_v46 = vld [vmem:[#allocation3 + $0xd8] sm:$0xff] }
  0x1d   :  { %1874 = vmatpush1.bf16.msra.mxu0 %v2678_v29  ;;  %1906 = vmatpush1.bf16.msra.mxu1 %v2680_v30  ;;  %v394_v47 = vld [vmem:[#allocation3 + $0xf8] sm:$0xff]  ;;  %v387_v48 = vld [vmem:[#allocation3 + $0xc0] sm:$0xff]  ;;  %v389_v50 = vld [vmem:[#allocation3 + $0xd0] sm:$0xff]  ;;  %v2710_v53 = vpack.c.bf16 %v392_v43, %v388_v42 }
  0x1e   :  { %177 = vmatprep.mubr.f32.mxu0 %v2604_v0  ;;  %290 = vmatprep.mubr.f32.mxu1 %v2604_v0  ;;  %v391_v49 = vld [vmem:[#allocation3 + $0xe0] sm:$0xff]  ;;  %v393_v51 = vld [vmem:[#allocation3 + $0xf0] sm:$0xff]  ;;  %v34_v52 = vld [vmem:[%s3116_s0 + $0x18] sm:$0xff]  ;;  %v2712_v54 = vpack.c.bf16 %v394_v47, %v390_v46 }
  0x1f   :  { %1827 = vmatmul.mubr.msk.f32.gmra.mrb[4].mxu0 %vm67_vm1, %v33_v39  ;;  %1837 = vmatmul.mubr.msk.f32.gmra.mrb[4].mxu1 %vm67_vm1, %v33_v39  ;;  %v396_v55 = vld [vmem:[#allocation3 + $0x108] sm:$0xff]  ;;  %v2716_v57 = vpack.c.bf16 %v391_v49, %v387_v48  ;;  %v2718_v58 = vpack.c.bf16 %v393_v51, %v389_v50  ;;  %v398_v59 = vld [vmem:[#allocation3 + $0x118] sm:$0xff]  ;;  %v395_v61 = vld [vmem:[#allocation3 + $0x100] sm:$0xff] }
  0x20   :  { %1876 = vmatprep.subr.bf16.mxu0 %v2691_v40  ;;  %1908 = vmatprep.subr.bf16.mxu1 %v2693_v41  ;;  %v400_v56 = vld [vmem:[#allocation3 + $0x128] sm:$0xff]  ;;  %v402_v60 = vld [vmem:[#allocation3 + $0x138] sm:$0xff]  ;;  %v399_v62 = vld [vmem:[#allocation3 + $0x120] sm:$0xff] }
  0x21   :  { %1878 = vmatpush1.bf16.msra.mxu0 %v2697_v44  ;;  %1910 = vmatpush1.bf16.msra.mxu1 %v2699_v45  ;;  %v397_v63 = vld [vmem:[#allocation3 + $0x110] sm:$0xff]  ;;  %v35_v2 = vld [vmem:[%s3116_s0 + $0x20] sm:$0xff]  ;;  %v2729_v3 = vpack.c.bf16 %v400_v56, %v396_v55  ;;  %v2731_v4 = vpack.c.bf16 %v402_v60, %v398_v59  ;;  %v404_v5 = vld [vmem:[#allocation3 + $0x148] sm:$0xff]  ;;  %v2735_v7 = vpack.c.bf16 %v399_v62, %v395_v61  ;;  %v43_v62 = vlaneseq }
  0x22   :  { %183 = vmatprep.mubr.f32.mxu0 %v2604_v0  ;;  %296 = vmatprep.mubr.f32.mxu1 %v2604_v0  ;;  %v401_v1 = vld [vmem:[#allocation3 + $0x130] sm:$0xff]  ;;  %v408_v6 = vld [vmem:[#allocation3 + $0x168] sm:$0xff]  ;;  %v406_v10 = vld [vmem:[#allocation3 + $0x158] sm:$0xff] }
  0x23   :  { %1828 = vmatmul.mubr.msk.f32.gmra.mrb[6].mxu0 %vm67_vm1, %v34_v52  ;;  %1838 = vmatmul.mubr.msk.f32.gmra.mrb[6].mxu1 %vm67_vm1, %v34_v52  ;;  %v2737_v8 = vpack.c.bf16 %v401_v1, %v397_v63  ;;  %v410_v11 = vld [vmem:[#allocation3 + $0x178] sm:$0xff]  ;;  %v403_v12 = vld [vmem:[#allocation3 + $0x140] sm:$0xff]  ;;  %v405_v16 = vld [vmem:[#allocation3 + $0x150] sm:$0xff]  ;;  %v2748_v20 = vpack.c.bf16 %v408_v6, %v404_v5  ;;  %v44_v63 = vshrl.u32 %v43_v62, 7 }
  0x24   :  { %1880 = vmatprep.subr.bf16.mxu0 %v2710_v53  ;;  %1912 = vmatprep.subr.bf16.mxu1 %v2712_v54  ;;  %v407_v15 = vld [vmem:[#allocation3 + $0x160] sm:$0xff]  ;;  %v409_v18 = vld [vmem:[#allocation3 + $0x170] sm:$0xff]  ;;  %v36_v19 = vld [vmem:[%s3116_s0 + $0x28] sm:$0xff]  ;;  %v2750_v21 = vpack.c.bf16 %v410_v11, %v406_v10 }
  0x25   :  { %1882 = vmatpush1.bf16.msra.mxu0 %v2716_v57  ;;  %1914 = vmatpush1.bf16.msra.mxu1 %v2718_v58  ;;  %v412_v22 = vld [vmem:[#allocation3 + $0x188] sm:$0xff]  ;;  %v2754_v24 = vpack.c.bf16 %v407_v15, %v403_v12  ;;  %v2756_v27 = vpack.c.bf16 %v409_v18, %v405_v16  ;;  %v414_v28 = vld [vmem:[#allocation3 + $0x198] sm:$0xff]  ;;  %v411_v32 = vld [vmem:[#allocation3 + $0x180] sm:$0xff]  ;;  %v45_v1 = vsub.s32 0, %v44_v63  ;;  %v49_v5 = vsub.s32 1, %v44_v63 }
  0x26   :  { %189 = vmatprep.mubr.f32.mxu0 %v2604_v0  ;;  %302 = vmatprep.mubr.f32.mxu1 %v2604_v0  ;;  %v416_v23 = vld [vmem:[#allocation3 + $0x1a8] sm:$0xff]  ;;  %v418_v31 = vld [vmem:[#allocation3 + $0x1b8] sm:$0xff]  ;;  %v415_v33 = vld [vmem:[#allocation3 + $0x1a0] sm:$0xff]  ;;  %v57_v15 = vsub.s32 3, %v44_v63 }
  0x27   :  { %1829 = vmatmul.mubr.msk.f32.gmra.mrb[8].mxu0 %vm67_vm1, %v35_v2  ;;  %1839 = vmatmul.mubr.msk.f32.gmra.mrb[8].mxu1 %vm67_vm1, %v35_v2  ;;  %v413_v34 = vld [vmem:[#allocation3 + $0x190] sm:$0xff]  ;;  %v2767_v37 = vpack.c.bf16 %v416_v23, %v412_v22  ;;  %v2769_v38 = vpack.c.bf16 %v418_v31, %v414_v28  ;;  %v420_v39 = vld [vmem:[#allocation3 + $0x1c8] sm:$0xff]  ;;  %v2773_v43 = vpack.c.bf16 %v415_v33, %v411_v32  ;;  %v422_v47 = vld [vmem:[#allocation3 + $0x1d8] sm:$0xff]  ;;  %v53_v32 = vsub.s32 2, %v44_v63 }
  0x28   :  { %1884 = vmatprep.subr.bf16.mxu0 %v2729_v3  ;;  %1916 = vmatprep.subr.bf16.mxu1 %v2731_v4  ;;  %v417_v35 = vld [vmem:[#allocation3 + $0x1b0] sm:$0xff]  ;;  %v424_v42 = vld [vmem:[#allocation3 + $0x1e8] sm:$0xff]  ;;  %v426_v48 = vld [vmem:[#allocation3 + $0x1f8] sm:$0xff] }
  0x29   :  { %1886 = vmatpush1.bf16.msra.mxu0 %v2735_v7  ;;  %1918 = vmatpush1.bf16.msra.mxu1 %v2737_v8  ;;  %v37_v36 = vld [vmem:[%s3116_s0 + $0x30] sm:$0xff]  ;;  %v2775_v46 = vpack.c.bf16 %v417_v35, %v413_v34  ;;  %v419_v49 = vld [vmem:[#allocation3 + $0x1c0] sm:$0xff]  ;;  %v38_v55 = vld [vmem:[%s3116_s0 + $0x38] sm:$0xff]  ;;  %v2786_v56 = vpack.c.bf16 %v424_v42, %v420_v39  ;;  %v2788_v59 = vpack.c.bf16 %v426_v48, %v422_v47 }
  0x2a   :  { %195 = vmatprep.mubr.f32.mxu0 %v2604_v0  ;;  %308 = vmatprep.mubr.f32.mxu1 %v2604_v0  ;;  %v423_v50 = vld [vmem:[#allocation3 + $0x1e0] sm:$0xff]  ;;  %v421_v51 = vld [vmem:[#allocation3 + $0x1d0] sm:$0xff] }
  0x2b   :  { %1830 = vmatmul.mubr.msk.f32.gmra.mrb[10].mxu0 %vm67_vm1, %v36_v19  ;;  %1840 = vmatmul.mubr.msk.f32.gmra.mrb[10].mxu1 %vm67_vm1, %v36_v19  ;;  %v425_v52 = vld [vmem:[#allocation3 + $0x1f0] sm:$0xff]  ;;  %v2792_v60 = vpack.c.bf16 %v423_v50, %v419_v49  ;;  %v41_v2 = vld [vmem:[%s3119_s3] sm:$0xf] }
  0x2c   :  { %1888 = vmatprep.subr.bf16.mxu0 %v2748_v20  ;;  %1920 = vmatprep.subr.bf16.mxu1 %v2750_v21  ;;  %v2794_v61 = vpack.c.bf16 %v425_v52, %v421_v51  ;;  %v2847_v6 = vrot.slane %v41_v2, %v45_v1  ;;  %v2849_v10 = vrot.slane %v41_v2, %v49_v5 }
  0x2d   :  { %1890 = vmatpush1.bf16.msra.mxu0 %v2754_v24  ;;  %1922 = vmatpush1.bf16.msra.mxu1 %v2756_v27  ;;  %v2853_v31 = vrot.slane %v41_v2, %v57_v15  ;;  %v2856_v34 = vrot.slane %v41_v2, %v53_v32 }
  0x2e   :  { %201 = vmatprep.mubr.f32.mxu0 %v2604_v0  ;;  %314 = vmatprep.mubr.f32.mxu1 %v2604_v0 }
  0x2f   :  { %1831 = vmatmul.mubr.msk.f32.gmra.mrb[12].mxu0 %vm67_vm1, %v37_v36  ;;  %1841 = vmatmul.mubr.msk.f32.gmra.mrb[12].mxu1 %vm67_vm1, %v37_v36 }
  0x30   :  { %1892 = vmatprep.subr.bf16.mxu0 %v2767_v37  ;;  %1924 = vmatprep.subr.bf16.mxu1 %v2769_v38 }
  0x31   :  { %1894 = vmatpush1.bf16.msra.mxu0 %v2773_v43  ;;  %1926 = vmatpush1.bf16.msra.mxu1 %v2775_v46 }
  0x32   :  { %207 = vmatprep.mubr.f32.mxu0 %v2604_v0  ;;  %320 = vmatprep.mubr.f32.mxu1 %v2604_v0 }
  0x33   :  { %1832 = vmatmul.mubr.msk.f32.gmra.mrb[14].mxu0 %vm67_vm1, %v38_v55  ;;  %1842 = vmatmul.mubr.msk.f32.gmra.mrb[14].mxu1 %vm67_vm1, %v38_v55 }
  0x34   :  { %1896 = vmatprep.subr.bf16.mxu0 %v2786_v56  ;;  %1928 = vmatprep.subr.bf16.mxu1 %v2788_v59 }
  0x35   :  { %1898 = vmatpush1.bf16.msra.mxu0 %v2792_v60  ;;  %1930 = vmatpush1.bf16.msra.mxu1 %v2794_v61 }
  0x36   :  { %491 = vmatprep.mubr.f32.mxu0 %v2604_v0  ;;  %562 = vmatprep.mubr.f32.mxu1 %v2604_v0 }
  0x37   :  { %1932 = vmatprep.subr.bf16.mxu0 %v2653_v9  ;;  %1964 = vmatprep.subr.bf16.mxu1 %v2657_v13 }
  0x38   :  { %492 = vmatmul.mubr.f32.vlgmr.msra.gmra.mrb[0].mxu0 %v2604_v0  ;;  %563 = vmatmul.mubr.f32.vlgmr.msra.gmra.mrb[0].mxu1 %v2604_v0 }
  0x39   :  { %1934 = vmatpush1.bf16.msra.mxu0 %v2659_v14  ;;  %1966 = vmatpush1.bf16.msra.mxu1 %v2663_v17 }
  0x3a   :  { %1936 = vmatprep.subr.bf16.mxu0 %v2672_v25  ;;  %1968 = vmatprep.subr.bf16.mxu1 %v2674_v26 }
  0x3b   :  { %665 = vmatprep.mubr.f32.mxu0 %v2604_v0  ;;  %736 = vmatprep.mubr.f32.mxu1 %v2604_v0 }
  0x3d   :  { %1938 = vmatpush1.bf16.msra.mxu0 %v2678_v29  ;;  %1970 = vmatpush1.bf16.msra.mxu1 %v2680_v30 }
  0x3e   :  { %1940 = vmatprep.subr.bf16.mxu0 %v2691_v40  ;;  %1972 = vmatprep.subr.bf16.mxu1 %v2693_v41 }
  0x41   :  { %1942 = vmatpush1.bf16.msra.mxu0 %v2697_v44  ;;  %1974 = vmatpush1.bf16.msra.mxu1 %v2699_v45 }
  0x42   :  { %1944 = vmatprep.subr.bf16.mxu0 %v2710_v53  ;;  %1976 = vmatprep.subr.bf16.mxu1 %v2712_v54 }
  0x45   :  { %1946 = vmatpush1.bf16.msra.mxu0 %v2716_v57  ;;  %1978 = vmatpush1.bf16.msra.mxu1 %v2718_v58 }
  0x46   :  { %1948 = vmatprep.subr.bf16.mxu0 %v2729_v3  ;;  %1980 = vmatprep.subr.bf16.mxu1 %v2731_v4 }
  0x49   :  { %1950 = vmatpush1.bf16.msra.mxu0 %v2735_v7  ;;  %1982 = vmatpush1.bf16.msra.mxu1 %v2737_v8 }
  0x4a   :  { %1952 = vmatprep.subr.bf16.mxu0 %v2748_v20  ;;  %1984 = vmatprep.subr.bf16.mxu1 %v2750_v21 }
  0x4d   :  { %1954 = vmatpush1.bf16.msra.mxu0 %v2754_v24  ;;  %1986 = vmatpush1.bf16.msra.mxu1 %v2756_v27 }
  0x4e   :  { %1956 = vmatprep.subr.bf16.mxu0 %v2767_v37  ;;  %1988 = vmatprep.subr.bf16.mxu1 %v2769_v38 }
  0x51   :  { %1958 = vmatpush1.bf16.msra.mxu0 %v2773_v43  ;;  %1990 = vmatpush1.bf16.msra.mxu1 %v2775_v46 }
  0x52   :  { %1960 = vmatprep.subr.bf16.mxu0 %v2786_v56  ;;  %1992 = vmatprep.subr.bf16.mxu1 %v2788_v59 }
  0x55   :  { %1962 = vmatpush1.bf16.msra.mxu0 %v2792_v60  ;;  %1994 = vmatpush1.bf16.msra.mxu1 %v2794_v61 }
  0x56   :  { %1996 = vmatprep.subr.bf16.mxu0 %v2653_v9  ;;  %2028 = vmatprep.subr.bf16.mxu1 %v2657_v13 }
 0x10b   :  { %v493_v11 = vpop.f32.mrb[0].mxu0  ;;  %v564_v12 = vpop.f32.mrb[0].mxu1 }
 0x10c   :  { %v2379_v16 = vadd.f32 %v493_v11, %v2847_v6  ;;  %v495_v18 = vpop.f32.mrb[1].mxu0  ;;  %v566_v19 = vpop.f32.mrb[1].mxu1  ;;  %v2395_v36 = vadd.f32 %v564_v12, %v2856_v34 }
 0x10d   :  { %v2380_v22 = vadd.f32 %v495_v18, %v2849_v10  ;;  %v2396_v33 = vadd.f32 %v566_v19, %v2853_v31 }
 0x10e   :  { %v1843_v23 = vmul.f32 -1.442695, %v2379_v16 }
 0x10f   :  { %v1844_v28 = vmul.f32 -1.442695, %v2380_v22  ;;  %v1845_v35 = vmul.f32 -1.442695, %v2396_v33 }
 0x110   :  { %2449 = vpow2.f32 %v1843_v23 }
 0x111   :  { %2451 = vpow2.f32 %v1844_v28 }
 0x112   :  { %2453 = vpow2.f32 %v1845_v35 }
 0x113   :  { %2455 = vtanh.f32 %v2395_v36 }
 0x11a   :  { %v2450_v39 = vpop.eup %2449 }
 0x11b   :  { %v2452_v42 = vpop.eup %2451  ;;  %v576_v47 = vadd.f32 1.0, %v2450_v39 }
 0x11c   :  { %v582_v48 = vadd.f32 1.0, %v2452_v42  ;;  %v2454_v49 = vpop.eup %2453 }
 0x11d   :  { %2457 = vrcp.f32 %v576_v47  ;;  %v2456_v50 = vpop.eup %2455  ;;  %v589_v62 = vadd.f32 1.0, %v2454_v49 }
 0x11e   :  { %2459 = vrcp.f32 %v582_v48 }
 0x11f   :  { %2461 = vrcp.f32 %v589_v62 }
 0x127   :  { %v2458_v51 = vpop.eup %2457 }
 0x128   :  { %v2460_v52 = vpop.eup %2459  ;;  %v593_v55 = vmul.f32 %v2458_v51, %v2456_v50 }
 0x129   :  { %v592_v63 = vmul.f32 0.0, %v2460_v52  ;;  %v2462_v2 = vpop.eup %2461 }
 0x12b   :  { %v2859_v1 = vadd.f32 %v593_v55, %v592_v63 }
 0x12d   :  { %2463 = vtanh.f32 %v2859_v1 }
 0x137   :  { %v2464_v5 = vpop.eup %2463 }
 0x138   :  { %v596_v11 = vmul.f32 %v2464_v5, %v2462_v2 }
 0x13a   :  { %666 = vmatmul.mubr.f32.vlgmr.msra.gmra.mrb[2].mxu0 %v596_v11  ;;  %737 = vmatmul.mubr.f32.vlgmr.msra.gmra.mrb[2].mxu1 %v596_v11 }
 0x13b   :  { %1998 = vmatpush1.bf16.msra.mxu0 %v2659_v14  ;;  %2030 = vmatpush1.bf16.msra.mxu1 %v2663_v17 }
 0x13c   :  { %2000 = vmatprep.subr.bf16.mxu0 %v2672_v25  ;;  %2032 = vmatprep.subr.bf16.mxu1 %v2674_v26 }
 0x13d   :  { %839 = vmatprep.mubr.f32.mxu0 %v2604_v0  ;;  %910 = vmatprep.mubr.f32.mxu1 %v2604_v0 }
 0x13f   :  { %2002 = vmatpush1.bf16.msra.mxu0 %v2678_v29  ;;  %2034 = vmatpush1.bf16.msra.mxu1 %v2680_v30 }
 0x140   :  { %2004 = vmatprep.subr.bf16.mxu0 %v2691_v40  ;;  %2036 = vmatprep.subr.bf16.mxu1 %v2693_v41 }
 0x143   :  { %2006 = vmatpush1.bf16.msra.mxu0 %v2697_v44  ;;  %2038 = vmatpush1.bf16.msra.mxu1 %v2699_v45 }
 0x144   :  { %2008 = vmatprep.subr.bf16.mxu0 %v2710_v53  ;;  %2040 = vmatprep.subr.bf16.mxu1 %v2712_v54 }
 0x147   :  { %2010 = vmatpush1.bf16.msra.mxu0 %v2716_v57  ;;  %2042 = vmatpush1.bf16.msra.mxu1 %v2718_v58 }
 0x148   :  { %2012 = vmatprep.subr.bf16.mxu0 %v2729_v3  ;;  %2044 = vmatprep.subr.bf16.mxu1 %v2731_v4 }
 0x14b   :  { %2014 = vmatpush1.bf16.msra.mxu0 %v2735_v7  ;;  %2046 = vmatpush1.bf16.msra.mxu1 %v2737_v8 }
 0x14c   :  { %2016 = vmatprep.subr.bf16.mxu0 %v2748_v20  ;;  %2048 = vmatprep.subr.bf16.mxu1 %v2750_v21 }
 0x14f   :  { %2018 = vmatpush1.bf16.msra.mxu0 %v2754_v24  ;;  %2050 = vmatpush1.bf16.msra.mxu1 %v2756_v27 }
 0x150   :  { %2020 = vmatprep.subr.bf16.mxu0 %v2767_v37  ;;  %2052 = vmatprep.subr.bf16.mxu1 %v2769_v38 }
 0x153   :  { %2022 = vmatpush1.bf16.msra.mxu0 %v2773_v43  ;;  %2054 = vmatpush1.bf16.msra.mxu1 %v2775_v46 }
 0x154   :  { %2024 = vmatprep.subr.bf16.mxu0 %v2786_v56  ;;  %2056 = vmatprep.subr.bf16.mxu1 %v2788_v59 }
 0x157   :  { %2026 = vmatpush1.bf16.msra.mxu0 %v2792_v60  ;;  %2058 = vmatpush1.bf16.msra.mxu1 %v2794_v61 }
 0x158   :  { %2060 = vmatprep.subr.bf16.mxu0 %v2653_v9  ;;  %2092 = vmatprep.subr.bf16.mxu1 %v2657_v13 }
 0x20d   :  { %v667_v12 = vpop.f32.mrb[2].mxu0  ;;  %v738_v15 = vpop.f32.mrb[2].mxu1 }
 0x20e   :  { %v2381_v16 = vadd.f32 %v667_v12, %v2847_v6  ;;  %v669_v18 = vpop.f32.mrb[3].mxu0  ;;  %v740_v19 = vpop.f32.mrb[3].mxu1  ;;  %v2397_v35 = vadd.f32 %v738_v15, %v2856_v34 }
 0x20f   :  { %v2382_v22 = vadd.f32 %v669_v18, %v2849_v10  ;;  %v2398_v32 = vadd.f32 %v740_v19, %v2853_v31 }
 0x210   :  { %v1846_v23 = vmul.f32 -1.442695, %v2381_v16 }
 0x211   :  { %v1847_v28 = vmul.f32 -1.442695, %v2382_v22  ;;  %v1848_v33 = vmul.f32 -1.442695, %v2398_v32 }
 0x212   :  { %2465 = vpow2.f32 %v1846_v23 }
 0x213   :  { %2467 = vpow2.f32 %v1847_v28 }
 0x214   :  { %2469 = vpow2.f32 %v1848_v33 }
 0x215   :  { %2471 = vtanh.f32 %v2397_v35 }
 0x21c   :  { %v2466_v36 = vpop.eup %2465 }
 0x21d   :  { %v2468_v39 = vpop.eup %2467  ;;  %v750_v42 = vadd.f32 1.0, %v2466_v36 }
 0x21e   :  { %v756_v47 = vadd.f32 1.0, %v2468_v39  ;;  %v2470_v48 = vpop.eup %2469 }
 0x21f   :  { %2473 = vrcp.f32 %v750_v42  ;;  %v2472_v49 = vpop.eup %2471  ;;  %v763_v55 = vadd.f32 1.0, %v2470_v48 }
 0x220   :  { %2475 = vrcp.f32 %v756_v47 }
 0x221   :  { %2477 = vrcp.f32 %v763_v55 }
 0x229   :  { %v2474_v50 = vpop.eup %2473 }
 0x22a   :  { %v2476_v51 = vpop.eup %2475  ;;  %v767_v52 = vmul.f32 %v2474_v50, %v2472_v49 }
 0x22b   :  { %v766_v62 = vmul.f32 %v2476_v51, %v2859_v1  ;;  %v2478_v2 = vpop.eup %2477 }
 0x22d   :  { %v2901_v63 = vadd.f32 %v767_v52, %v766_v62 }
 0x22f   :  { %2479 = vtanh.f32 %v2901_v63 }
 0x239   :  { %v2480_v5 = vpop.eup %2479 }
 0x23a   :  { %v770_v11 = vmul.f32 %v2480_v5, %v2478_v2 }
 0x23c   :  { %840 = vmatmul.mubr.f32.vlgmr.msra.gmra.mrb[4].mxu0 %v770_v11  ;;  %911 = vmatmul.mubr.f32.vlgmr.msra.gmra.mrb[4].mxu1 %v770_v11 }
 0x23d   :  { %2062 = vmatpush1.bf16.msra.mxu0 %v2659_v14  ;;  %2094 = vmatpush1.bf16.msra.mxu1 %v2663_v17 }
 0x23e   :  { %2064 = vmatprep.subr.bf16.mxu0 %v2672_v25  ;;  %2096 = vmatprep.subr.bf16.mxu1 %v2674_v26 }
 0x23f   :  { %1013 = vmatprep.mubr.f32.mxu0 %v2604_v0  ;;  %1084 = vmatprep.mubr.f32.mxu1 %v2604_v0 }
 0x241   :  { %2066 = vmatpush1.bf16.msra.mxu0 %v2678_v29  ;;  %2098 = vmatpush1.bf16.msra.mxu1 %v2680_v30 }
 0x242   :  { %2068 = vmatprep.subr.bf16.mxu0 %v2691_v40  ;;  %2100 = vmatprep.subr.bf16.mxu1 %v2693_v41 }
 0x245   :  { %2070 = vmatpush1.bf16.msra.mxu0 %v2697_v44  ;;  %2102 = vmatpush1.bf16.msra.mxu1 %v2699_v45 }
 0x246   :  { %2072 = vmatprep.subr.bf16.mxu0 %v2710_v53  ;;  %2104 = vmatprep.subr.bf16.mxu1 %v2712_v54 }
 0x249   :  { %2074 = vmatpush1.bf16.msra.mxu0 %v2716_v57  ;;  %2106 = vmatpush1.bf16.msra.mxu1 %v2718_v58 }
 0x24a   :  { %2076 = vmatprep.subr.bf16.mxu0 %v2729_v3  ;;  %2108 = vmatprep.subr.bf16.mxu1 %v2731_v4 }
 0x24d   :  { %2078 = vmatpush1.bf16.msra.mxu0 %v2735_v7  ;;  %2110 = vmatpush1.bf16.msra.mxu1 %v2737_v8 }
 0x24e   :  { %2080 = vmatprep.subr.bf16.mxu0 %v2748_v20  ;;  %2112 = vmatprep.subr.bf16.mxu1 %v2750_v21 }
 0x251   :  { %2082 = vmatpush1.bf16.msra.mxu0 %v2754_v24  ;;  %2114 = vmatpush1.bf16.msra.mxu1 %v2756_v27 }
 0x252   :  { %2084 = vmatprep.subr.bf16.mxu0 %v2767_v37  ;;  %2116 = vmatprep.subr.bf16.mxu1 %v2769_v38 }
 0x255   :  { %2086 = vmatpush1.bf16.msra.mxu0 %v2773_v43  ;;  %2118 = vmatpush1.bf16.msra.mxu1 %v2775_v46 }
 0x256   :  { %2088 = vmatprep.subr.bf16.mxu0 %v2786_v56  ;;  %2120 = vmatprep.subr.bf16.mxu1 %v2788_v59 }
 0x259   :  { %2090 = vmatpush1.bf16.msra.mxu0 %v2792_v60  ;;  %2122 = vmatpush1.bf16.msra.mxu1 %v2794_v61 }
 0x25a   :  { %2124 = vmatprep.subr.bf16.mxu0 %v2653_v9  ;;  %2156 = vmatprep.subr.bf16.mxu1 %v2657_v13 }
 0x30f   :  { %v841_v1 = vpop.f32.mrb[4].mxu0  ;;  %v912_v12 = vpop.f32.mrb[4].mxu1 }
 0x310   :  { %v2383_v15 = vadd.f32 %v841_v1, %v2847_v6  ;;  %v843_v16 = vpop.f32.mrb[5].mxu0  ;;  %v914_v18 = vpop.f32.mrb[5].mxu1  ;;  %v2399_v33 = vadd.f32 %v912_v12, %v2856_v34 }
 0x311   :  { %v2384_v19 = vadd.f32 %v843_v16, %v2849_v10  ;;  %v2400_v28 = vadd.f32 %v914_v18, %v2853_v31 }
 0x312   :  { %v1849_v22 = vmul.f32 -1.442695, %v2383_v15 }
 0x313   :  { %v1850_v23 = vmul.f32 -1.442695, %v2384_v19  ;;  %v1851_v32 = vmul.f32 -1.442695, %v2400_v28 }
 0x314   :  { %2481 = vpow2.f32 %v1849_v22 }
 0x315   :  { %2483 = vpow2.f32 %v1850_v23 }
 0x316   :  { %2485 = vpow2.f32 %v1851_v32 }
 0x317   :  { %2487 = vtanh.f32 %v2399_v33 }
 0x31e   :  { %v2482_v35 = vpop.eup %2481 }
 0x31f   :  { %v2484_v36 = vpop.eup %2483  ;;  %v924_v39 = vadd.f32 1.0, %v2482_v35 }
 0x320   :  { %v930_v42 = vadd.f32 1.0, %v2484_v36  ;;  %v2486_v47 = vpop.eup %2485 }
 0x321   :  { %2489 = vrcp.f32 %v924_v39  ;;  %v2488_v48 = vpop.eup %2487  ;;  %v937_v52 = vadd.f32 1.0, %v2486_v47 }
 0x322   :  { %2491 = vrcp.f32 %v930_v42 }
 0x323   :  { %2493 = vrcp.f32 %v937_v52 }
 0x32b   :  { %v2490_v49 = vpop.eup %2489 }
 0x32c   :  { %v2492_v50 = vpop.eup %2491  ;;  %v941_v51 = vmul.f32 %v2490_v49, %v2488_v48 }
 0x32d   :  { %v940_v55 = vmul.f32 %v2492_v50, %v2901_v63  ;;  %v2494_v2 = vpop.eup %2493 }
 0x32f   :  { %v2943_v62 = vadd.f32 %v941_v51, %v940_v55 }
 0x331   :  { %2495 = vtanh.f32 %v2943_v62 }
 0x33b   :  { %v2496_v5 = vpop.eup %2495 }
 0x33c   :  { %v944_v11 = vmul.f32 %v2496_v5, %v2494_v2 }
 0x33e   :  { %1014 = vmatmul.mubr.f32.vlgmr.msra.gmra.mrb[6].mxu0 %v944_v11  ;;  %1085 = vmatmul.mubr.f32.vlgmr.msra.gmra.mrb[6].mxu1 %v944_v11 }
 0x33f   :  { %2126 = vmatpush1.bf16.msra.mxu0 %v2659_v14  ;;  %2158 = vmatpush1.bf16.msra.mxu1 %v2663_v17 }
 0x340   :  { %2128 = vmatprep.subr.bf16.mxu0 %v2672_v25  ;;  %2160 = vmatprep.subr.bf16.mxu1 %v2674_v26 }
 0x341   :  { %1187 = vmatprep.mubr.f32.mxu0 %v2604_v0  ;;  %1258 = vmatprep.mubr.f32.mxu1 %v2604_v0 }
 0x343   :  { %2130 = vmatpush1.bf16.msra.mxu0 %v2678_v29  ;;  %2162 = vmatpush1.bf16.msra.mxu1 %v2680_v30 }
 0x344   :  { %2132 = vmatprep.subr.bf16.mxu0 %v2691_v40  ;;  %2164 = vmatprep.subr.bf16.mxu1 %v2693_v41 }
 0x347   :  { %2134 = vmatpush1.bf16.msra.mxu0 %v2697_v44  ;;  %2166 = vmatpush1.bf16.msra.mxu1 %v2699_v45 }
 0x348   :  { %2136 = vmatprep.subr.bf16.mxu0 %v2710_v53  ;;  %2168 = vmatprep.subr.bf16.mxu1 %v2712_v54 }
 0x34b   :  { %2138 = vmatpush1.bf16.msra.mxu0 %v2716_v57  ;;  %2170 = vmatpush1.bf16.msra.mxu1 %v2718_v58 }
 0x34c   :  { %2140 = vmatprep.subr.bf16.mxu0 %v2729_v3  ;;  %2172 = vmatprep.subr.bf16.mxu1 %v2731_v4 }
 0x34f   :  { %2142 = vmatpush1.bf16.msra.mxu0 %v2735_v7  ;;  %2174 = vmatpush1.bf16.msra.mxu1 %v2737_v8 }
 0x350   :  { %2144 = vmatprep.subr.bf16.mxu0 %v2748_v20  ;;  %2176 = vmatprep.subr.bf16.mxu1 %v2750_v21 }
 0x353   :  { %2146 = vmatpush1.bf16.msra.mxu0 %v2754_v24  ;;  %2178 = vmatpush1.bf16.msra.mxu1 %v2756_v27 }
 0x354   :  { %2148 = vmatprep.subr.bf16.mxu0 %v2767_v37  ;;  %2180 = vmatprep.subr.bf16.mxu1 %v2769_v38 }
 0x357   :  { %2150 = vmatpush1.bf16.msra.mxu0 %v2773_v43  ;;  %2182 = vmatpush1.bf16.msra.mxu1 %v2775_v46 }
 0x358   :  { %2152 = vmatprep.subr.bf16.mxu0 %v2786_v56  ;;  %2184 = vmatprep.subr.bf16.mxu1 %v2788_v59 }
 0x35b   :  { %2154 = vmatpush1.bf16.msra.mxu0 %v2792_v60  ;;  %2186 = vmatpush1.bf16.msra.mxu1 %v2794_v61 }
 0x35c   :  { %2188 = vmatprep.subr.bf16.mxu0 %v2653_v9  ;;  %2220 = vmatprep.subr.bf16.mxu1 %v2657_v13 }
 0x411   :  { %v1015_v63 = vpop.f32.mrb[6].mxu0  ;;  %v1086_v1 = vpop.f32.mrb[6].mxu1 }
 0x412   :  { %v2385_v12 = vadd.f32 %v1015_v63, %v2847_v6  ;;  %v1017_v15 = vpop.f32.mrb[7].mxu0  ;;  %v1088_v16 = vpop.f32.mrb[7].mxu1  ;;  %v2401_v32 = vadd.f32 %v1086_v1, %v2856_v34 }
 0x413   :  { %v2386_v18 = vadd.f32 %v1017_v15, %v2849_v10  ;;  %v2402_v23 = vadd.f32 %v1088_v16, %v2853_v31 }
 0x414   :  { %v1852_v19 = vmul.f32 -1.442695, %v2385_v12 }
 0x415   :  { %v1853_v22 = vmul.f32 -1.442695, %v2386_v18  ;;  %v1854_v28 = vmul.f32 -1.442695, %v2402_v23 }
 0x416   :  { %2497 = vpow2.f32 %v1852_v19 }
 0x417   :  { %2499 = vpow2.f32 %v1853_v22 }
 0x418   :  { %2501 = vpow2.f32 %v1854_v28 }
 0x419   :  { %2503 = vtanh.f32 %v2401_v32 }
 0x420   :  { %v2498_v33 = vpop.eup %2497 }
 0x421   :  { %v2500_v35 = vpop.eup %2499  ;;  %v1098_v36 = vadd.f32 1.0, %v2498_v33 }
 0x422   :  { %v1104_v39 = vadd.f32 1.0, %v2500_v35  ;;  %v2502_v42 = vpop.eup %2501 }
 0x423   :  { %2505 = vrcp.f32 %v1098_v36  ;;  %v2504_v47 = vpop.eup %2503  ;;  %v1111_v51 = vadd.f32 1.0, %v2502_v42 }
 0x424   :  { %2507 = vrcp.f32 %v1104_v39 }
 0x425   :  { %2509 = vrcp.f32 %v1111_v51 }
 0x42d   :  { %v2506_v48 = vpop.eup %2505 }
 0x42e   :  { %v2508_v49 = vpop.eup %2507  ;;  %v1115_v50 = vmul.f32 %v2506_v48, %v2504_v47 }
 0x42f   :  { %v1114_v52 = vmul.f32 %v2508_v49, %v2943_v62  ;;  %v2510_v2 = vpop.eup %2509 }
 0x431   :  { %v2985_v55 = vadd.f32 %v1115_v50, %v1114_v52 }
 0x433   :  { %2511 = vtanh.f32 %v2985_v55 }
 0x43d   :  { %v2512_v5 = vpop.eup %2511 }
 0x43e   :  { %v1118_v11 = vmul.f32 %v2512_v5, %v2510_v2 }
 0x440   :  { %1188 = vmatmul.mubr.f32.vlgmr.msra.gmra.mrb[8].mxu0 %v1118_v11  ;;  %1259 = vmatmul.mubr.f32.vlgmr.msra.gmra.mrb[8].mxu1 %v1118_v11 }
 0x441   :  { %2190 = vmatpush1.bf16.msra.mxu0 %v2659_v14  ;;  %2222 = vmatpush1.bf16.msra.mxu1 %v2663_v17 }
 0x442   :  { %2192 = vmatprep.subr.bf16.mxu0 %v2672_v25  ;;  %2224 = vmatprep.subr.bf16.mxu1 %v2674_v26 }
 0x443   :  { %1361 = vmatprep.mubr.f32.mxu0 %v2604_v0  ;;  %1432 = vmatprep.mubr.f32.mxu1 %v2604_v0 }
 0x445   :  { %2194 = vmatpush1.bf16.msra.mxu0 %v2678_v29  ;;  %2226 = vmatpush1.bf16.msra.mxu1 %v2680_v30 }
 0x446   :  { %2196 = vmatprep.subr.bf16.mxu0 %v2691_v40  ;;  %2228 = vmatprep.subr.bf16.mxu1 %v2693_v41 }
 0x449   :  { %2198 = vmatpush1.bf16.msra.mxu0 %v2697_v44  ;;  %2230 = vmatpush1.bf16.msra.mxu1 %v2699_v45 }
 0x44a   :  { %2200 = vmatprep.subr.bf16.mxu0 %v2710_v53  ;;  %2232 = vmatprep.subr.bf16.mxu1 %v2712_v54 }
 0x44d   :  { %2202 = vmatpush1.bf16.msra.mxu0 %v2716_v57  ;;  %2234 = vmatpush1.bf16.msra.mxu1 %v2718_v58 }
 0x44e   :  { %2204 = vmatprep.subr.bf16.mxu0 %v2729_v3  ;;  %2236 = vmatprep.subr.bf16.mxu1 %v2731_v4 }
 0x451   :  { %2206 = vmatpush1.bf16.msra.mxu0 %v2735_v7  ;;  %2238 = vmatpush1.bf16.msra.mxu1 %v2737_v8 }
 0x452   :  { %2208 = vmatprep.subr.bf16.mxu0 %v2748_v20  ;;  %2240 = vmatprep.subr.bf16.mxu1 %v2750_v21 }
 0x455   :  { %2210 = vmatpush1.bf16.msra.mxu0 %v2754_v24  ;;  %2242 = vmatpush1.bf16.msra.mxu1 %v2756_v27 }
 0x456   :  { %2212 = vmatprep.subr.bf16.mxu0 %v2767_v37  ;;  %2244 = vmatprep.subr.bf16.mxu1 %v2769_v38 }
 0x459   :  { %2214 = vmatpush1.bf16.msra.mxu0 %v2773_v43  ;;  %2246 = vmatpush1.bf16.msra.mxu1 %v2775_v46 }
 0x45a   :  { %2216 = vmatprep.subr.bf16.mxu0 %v2786_v56  ;;  %2248 = vmatprep.subr.bf16.mxu1 %v2788_v59 }
 0x45d   :  { %2218 = vmatpush1.bf16.msra.mxu0 %v2792_v60  ;;  %2250 = vmatpush1.bf16.msra.mxu1 %v2794_v61 }
 0x45e   :  { %2252 = vmatprep.subr.bf16.mxu0 %v2653_v9  ;;  %2284 = vmatprep.subr.bf16.mxu1 %v2657_v13 }
 0x513   :  { %v1189_v62 = vpop.f32.mrb[8].mxu0  ;;  %v1260_v63 = vpop.f32.mrb[8].mxu1 }
 0x514   :  { %v2387_v1 = vadd.f32 %v1189_v62, %v2847_v6  ;;  %v1191_v12 = vpop.f32.mrb[9].mxu0  ;;  %v1262_v15 = vpop.f32.mrb[9].mxu1  ;;  %v2403_v28 = vadd.f32 %v1260_v63, %v2856_v34 }
 0x515   :  { %v2388_v16 = vadd.f32 %v1191_v12, %v2849_v10  ;;  %v2404_v22 = vadd.f32 %v1262_v15, %v2853_v31 }
 0x516   :  { %v1855_v18 = vmul.f32 -1.442695, %v2387_v1 }
 0x517   :  { %v1856_v19 = vmul.f32 -1.442695, %v2388_v16  ;;  %v1857_v23 = vmul.f32 -1.442695, %v2404_v22 }
 0x518   :  { %2513 = vpow2.f32 %v1855_v18 }
 0x519   :  { %2515 = vpow2.f32 %v1856_v19 }
 0x51a   :  { %2517 = vpow2.f32 %v1857_v23 }
 0x51b   :  { %2519 = vtanh.f32 %v2403_v28 }
 0x522   :  { %v2514_v32 = vpop.eup %2513 }
 0x523   :  { %v2516_v33 = vpop.eup %2515  ;;  %v1272_v35 = vadd.f32 1.0, %v2514_v32 }
 0x524   :  { %v1278_v36 = vadd.f32 1.0, %v2516_v33  ;;  %v2518_v39 = vpop.eup %2517 }
 0x525   :  { %2521 = vrcp.f32 %v1272_v35  ;;  %v2520_v42 = vpop.eup %2519  ;;  %v1285_v50 = vadd.f32 1.0, %v2518_v39 }
 0x526   :  { %2523 = vrcp.f32 %v1278_v36 }
 0x527   :  { %2525 = vrcp.f32 %v1285_v50 }
 0x52f   :  { %v2522_v47 = vpop.eup %2521 }
 0x530   :  { %v2524_v48 = vpop.eup %2523  ;;  %v1289_v49 = vmul.f32 %v2522_v47, %v2520_v42 }
 0x531   :  { %v1288_v51 = vmul.f32 %v2524_v48, %v2985_v55  ;;  %v2526_v2 = vpop.eup %2525 }
 0x533   :  { %v3027_v52 = vadd.f32 %v1289_v49, %v1288_v51 }
 0x535   :  { %2527 = vtanh.f32 %v3027_v52 }
 0x53f   :  { %v2528_v5 = vpop.eup %2527 }
 0x540   :  { %v1292_v11 = vmul.f32 %v2528_v5, %v2526_v2 }
 0x542   :  { %1362 = vmatmul.mubr.f32.vlgmr.msra.gmra.mrb[10].mxu0 %v1292_v11  ;;  %1433 = vmatmul.mubr.f32.vlgmr.msra.gmra.mrb[10].mxu1 %v1292_v11 }
 0x543   :  { %2254 = vmatpush1.bf16.msra.mxu0 %v2659_v14  ;;  %2286 = vmatpush1.bf16.msra.mxu1 %v2663_v17 }
 0x544   :  { %2256 = vmatprep.subr.bf16.mxu0 %v2672_v25  ;;  %2288 = vmatprep.subr.bf16.mxu1 %v2674_v26 }
 0x545   :  { %1535 = vmatprep.mubr.f32.mxu0 %v2604_v0  ;;  %1606 = vmatprep.mubr.f32.mxu1 %v2604_v0 }
 0x547   :  { %2258 = vmatpush1.bf16.msra.mxu0 %v2678_v29  ;;  %2290 = vmatpush1.bf16.msra.mxu1 %v2680_v30 }
 0x548   :  { %2260 = vmatprep.subr.bf16.mxu0 %v2691_v40  ;;  %2292 = vmatprep.subr.bf16.mxu1 %v2693_v41 }
 0x54b   :  { %2262 = vmatpush1.bf16.msra.mxu0 %v2697_v44  ;;  %2294 = vmatpush1.bf16.msra.mxu1 %v2699_v45 }
 0x54c   :  { %2264 = vmatprep.subr.bf16.mxu0 %v2710_v53  ;;  %2296 = vmatprep.subr.bf16.mxu1 %v2712_v54 }
 0x54f   :  { %2266 = vmatpush1.bf16.msra.mxu0 %v2716_v57  ;;  %2298 = vmatpush1.bf16.msra.mxu1 %v2718_v58 }
 0x550   :  { %2268 = vmatprep.subr.bf16.mxu0 %v2729_v3  ;;  %2300 = vmatprep.subr.bf16.mxu1 %v2731_v4 }
 0x553   :  { %2270 = vmatpush1.bf16.msra.mxu0 %v2735_v7  ;;  %2302 = vmatpush1.bf16.msra.mxu1 %v2737_v8 }
 0x554   :  { %2272 = vmatprep.subr.bf16.mxu0 %v2748_v20  ;;  %2304 = vmatprep.subr.bf16.mxu1 %v2750_v21 }
 0x557   :  { %2274 = vmatpush1.bf16.msra.mxu0 %v2754_v24  ;;  %2306 = vmatpush1.bf16.msra.mxu1 %v2756_v27 }
 0x558   :  { %2276 = vmatprep.subr.bf16.mxu0 %v2767_v37  ;;  %2308 = vmatprep.subr.bf16.mxu1 %v2769_v38 }
 0x55b   :  { %2278 = vmatpush1.bf16.msra.mxu0 %v2773_v43  ;;  %2310 = vmatpush1.bf16.msra.mxu1 %v2775_v46 }
 0x55c   :  { %2280 = vmatprep.subr.bf16.mxu0 %v2786_v56  ;;  %2312 = vmatprep.subr.bf16.mxu1 %v2788_v59 }
 0x55f   :  { %2282 = vmatpush1.bf16.msra.mxu0 %v2792_v60  ;;  %2314 = vmatpush1.bf16.msra.mxu1 %v2794_v61 }
 0x560   :  { %2316 = vmatprep.subr.bf16.mxu0 %v2653_v9  ;;  %2348 = vmatprep.subr.bf16.mxu1 %v2657_v13 }
 0x615   :  { %v1363_v55 = vpop.f32.mrb[10].mxu0  ;;  %v1434_v62 = vpop.f32.mrb[10].mxu1 }
 0x616   :  { %v2389_v63 = vadd.f32 %v1363_v55, %v2847_v6  ;;  %v1365_v1 = vpop.f32.mrb[11].mxu0  ;;  %v1436_v12 = vpop.f32.mrb[11].mxu1  ;;  %v2405_v23 = vadd.f32 %v1434_v62, %v2856_v34 }
 0x617   :  { %v2390_v15 = vadd.f32 %v1365_v1, %v2849_v10  ;;  %v2406_v19 = vadd.f32 %v1436_v12, %v2853_v31 }
 0x618   :  { %v1858_v16 = vmul.f32 -1.442695, %v2389_v63 }
 0x619   :  { %v1859_v18 = vmul.f32 -1.442695, %v2390_v15  ;;  %v1860_v22 = vmul.f32 -1.442695, %v2406_v19 }
 0x61a   :  { %2529 = vpow2.f32 %v1858_v16 }
 0x61b   :  { %2531 = vpow2.f32 %v1859_v18 }
 0x61c   :  { %2533 = vpow2.f32 %v1860_v22 }
 0x61d   :  { %2535 = vtanh.f32 %v2405_v23 }
 0x624   :  { %v2530_v9 = vpop.eup %2529 }
 0x625   :  { %v2532_v28 = vpop.eup %2531  ;;  %v1446_v13 = vadd.f32 1.0, %v2530_v9 }
 0x626   :  { %v1452_v32 = vadd.f32 1.0, %v2532_v28  ;;  %v2534_v33 = vpop.eup %2533 }
 0x627   :  { %2537 = vrcp.f32 %v1446_v13  ;;  %v2536_v35 = vpop.eup %2535  ;;  %v1459_v47 = vadd.f32 1.0, %v2534_v33 }
 0x628   :  { %2539 = vrcp.f32 %v1452_v32 }
 0x629   :  { %2541 = vrcp.f32 %v1459_v47 }
 0x631   :  { %v2538_v36 = vpop.eup %2537 }
 0x632   :  { %v2540_v39 = vpop.eup %2539  ;;  %v1463_v42 = vmul.f32 %v2538_v36, %v2536_v35 }
 0x633   :  { %v1462_v48 = vmul.f32 %v2540_v39, %v3027_v52  ;;  %v2542_v50 = vpop.eup %2541 }
 0x635   :  { %v3069_v49 = vadd.f32 %v1463_v42, %v1462_v48 }
 0x637   :  { %2543 = vtanh.f32 %v3069_v49 }
 0x641   :  { %v2544_v51 = vpop.eup %2543 }
 0x642   :  { %v1466_v2 = vmul.f32 %v2544_v51, %v2542_v50 }
 0x644   :  { %1536 = vmatmul.mubr.f32.vlgmr.msra.gmra.mrb[12].mxu0 %v1466_v2  ;;  %1607 = vmatmul.mubr.f32.vlgmr.msra.gmra.mrb[12].mxu1 %v1466_v2 }
 0x645   :  { %2318 = vmatpush1.bf16.msra.mxu0 %v2659_v14  ;;  %2350 = vmatpush1.bf16.msra.mxu1 %v2663_v17 }
 0x646   :  { %2320 = vmatprep.subr.bf16.mxu0 %v2672_v25  ;;  %2352 = vmatprep.subr.bf16.mxu1 %v2674_v26 }
 0x647   :  { %1709 = vmatprep.mubr.f32.mxu0 %v2604_v0  ;;  %1780 = vmatprep.mubr.f32.mxu1 %v2604_v0 }
 0x649   :  { %2322 = vmatpush1.bf16.msra.mxu0 %v2678_v29  ;;  %2354 = vmatpush1.bf16.msra.mxu1 %v2680_v30 }
 0x64a   :  { %2324 = vmatprep.subr.bf16.mxu0 %v2691_v40  ;;  %2356 = vmatprep.subr.bf16.mxu1 %v2693_v41 }
 0x64d   :  { %2326 = vmatpush1.bf16.msra.mxu0 %v2697_v44  ;;  %2358 = vmatpush1.bf16.msra.mxu1 %v2699_v45 }
 0x64e   :  { %2328 = vmatprep.subr.bf16.mxu0 %v2710_v53  ;;  %2360 = vmatprep.subr.bf16.mxu1 %v2712_v54 }
 0x651   :  { %2330 = vmatpush1.bf16.msra.mxu0 %v2716_v57  ;;  %2362 = vmatpush1.bf16.msra.mxu1 %v2718_v58 }
 0x652   :  { %2332 = vmatprep.subr.bf16.mxu0 %v2729_v3  ;;  %2364 = vmatprep.subr.bf16.mxu1 %v2731_v4 }
 0x655   :  { %2334 = vmatpush1.bf16.msra.mxu0 %v2735_v7  ;;  %2366 = vmatpush1.bf16.msra.mxu1 %v2737_v8 }
 0x656   :  { %2336 = vmatprep.subr.bf16.mxu0 %v2748_v20  ;;  %2368 = vmatprep.subr.bf16.mxu1 %v2750_v21 }
 0x659   :  { %2338 = vmatpush1.bf16.msra.mxu0 %v2754_v24  ;;  %2370 = vmatpush1.bf16.msra.mxu1 %v2756_v27 }
 0x65a   :  { %2340 = vmatprep.subr.bf16.mxu0 %v2767_v37  ;;  %2372 = vmatprep.subr.bf16.mxu1 %v2769_v38 }
 0x65d   :  { %2342 = vmatpush1.bf16.msra.mxu0 %v2773_v43  ;;  %2374 = vmatpush1.bf16.msra.mxu1 %v2775_v46 }
 0x65e   :  { %2344 = vmatprep.subr.bf16.mxu0 %v2786_v56  ;;  %2376 = vmatprep.subr.bf16.mxu1 %v2788_v59 }
 0x661   :  { %2346 = vmatpush1.bf16.msra.mxu0 %v2792_v60  ;;  %2378 = vmatpush1.bf16.msra.mxu1 %v2794_v61 }
 0x717   :  { %v1537_v0 = vpop.f32.mrb[12].mxu0  ;;  %v1608_v14 = vpop.f32.mrb[12].mxu1 }
 0x718   :  { %v2391_v17 = vadd.f32 %v1537_v0, %v2847_v6  ;;  %v1539_v25 = vpop.f32.mrb[13].mxu0  ;;  %v1610_v26 = vpop.f32.mrb[13].mxu1  ;;  %v2407_v45 = vadd.f32 %v1608_v14, %v2856_v34 }
 0x719   :  { %v2392_v29 = vadd.f32 %v1539_v25, %v2849_v10  ;;  %v2408_v41 = vadd.f32 %v1610_v26, %v2853_v31 }
 0x71a   :  { %v1861_v30 = vmul.f32 -1.442695, %v2391_v17 }
 0x71b   :  { %v1862_v40 = vmul.f32 -1.442695, %v2392_v29  ;;  %v1863_v44 = vmul.f32 -1.442695, %v2408_v41 }
 0x71c   :  { %2545 = vpow2.f32 %v1861_v30 }
 0x71d   :  { %2547 = vpow2.f32 %v1862_v40 }
 0x71e   :  { %2549 = vpow2.f32 %v1863_v44 }
 0x71f   :  { %2551 = vtanh.f32 %v2407_v45 }
 0x726   :  { %v2546_v53 = vpop.eup %2545 }
 0x727   :  { %v2548_v54 = vpop.eup %2547  ;;  %v1620_v57 = vadd.f32 1.0, %v2546_v53 }
 0x728   :  { %v1626_v58 = vadd.f32 1.0, %v2548_v54  ;;  %v2550_v3 = vpop.eup %2549 }
 0x729   :  { %2553 = vrcp.f32 %v1620_v57  ;;  %v2552_v4 = vpop.eup %2551  ;;  %v1633_v21 = vadd.f32 1.0, %v2550_v3 }
 0x72a   :  { %2555 = vrcp.f32 %v1626_v58 }
 0x72b   :  { %2557 = vrcp.f32 %v1633_v21 }
 0x733   :  { %v2554_v7 = vpop.eup %2553 }
 0x734   :  { %v2556_v8 = vpop.eup %2555  ;;  %v1637_v20 = vmul.f32 %v2554_v7, %v2552_v4 }
 0x735   :  { %v1636_v24 = vmul.f32 %v2556_v8, %v3069_v49  ;;  %v2558_v37 = vpop.eup %2557 }
 0x737   :  { %v1638_v27 = vadd.f32 %v1637_v20, %v1636_v24 }
 0x739   :  { %2559 = vtanh.f32 %v1638_v27 }
 0x743   :  { %v2560_v38 = vpop.eup %2559 }
 0x744   :  { %v1640_v43 = vmul.f32 %v2560_v38, %v2558_v37 }
 0x746   :  { %1710 = vmatmul.mubr.f32.vlgmr.msra.gmra.mrb[14].mxu0 %v1640_v43  ;;  %1781 = vmatmul.mubr.f32.vlgmr.msra.gmra.mrb[14].mxu1 %v1640_v43 }
 0x819   :  { %v1711_v46 = vpop.f32.mrb[14].mxu0  ;;  %v1782_v56 = vpop.f32.mrb[14].mxu1 }
 0x81a   :  { %v2393_v59 = vadd.f32 %v1711_v46, %v2847_v6  ;;  %v1713_v60 = vpop.f32.mrb[15].mxu0  ;;  %v1784_v61 = vpop.f32.mrb[15].mxu1  ;;  %v2409_v63 = vadd.f32 %v1782_v56, %v2856_v34 }
 0x81b   :  { %v2394_v52 = vadd.f32 %v1713_v60, %v2849_v10  ;;  %v2410_v55 = vadd.f32 %v1784_v61, %v2853_v31 }
 0x81c   :  { %v1864_v5 = vmul.f32 -1.442695, %v2393_v59 }
 0x81d   :  { %v1865_v11 = vmul.f32 -1.442695, %v2394_v52  ;;  %v1866_v62 = vmul.f32 -1.442695, %v2410_v55 }
 0x81e   :  { %2561 = vpow2.f32 %v1864_v5 }
 0x81f   :  { %2563 = vpow2.f32 %v1865_v11 }
 0x820   :  { %2565 = vpow2.f32 %v1866_v62 }
 0x821   :  { %2567 = vtanh.f32 %v2409_v63 }
 0x828   :  { %v2562_v1 = vpop.eup %2561 }
 0x829   :  { %v2564_v12 = vpop.eup %2563  ;;  %v1794_v15 = vadd.f32 1.0, %v2562_v1 }
 0x82a   :  { %v1800_v16 = vadd.f32 1.0, %v2564_v12  ;;  %v2566_v6 = vpop.eup %2565 }
 0x82b   :  { %2569 = vrcp.f32 %v1794_v15  ;;  %v2568_v18 = vpop.eup %2567  ;;  %v1807_v23 = vadd.f32 1.0, %v2566_v6 }
 0x82c   :  { %2571 = vrcp.f32 %v1800_v16 }
 0x82d   :  { %2573 = vrcp.f32 %v1807_v23 }
 0x835   :  { %v2570_v10 = vpop.eup %2569 }
 0x836   :  { %v2572_v19 = vpop.eup %2571  ;;  %v1811_v22 = vmul.f32 %v2570_v10, %v2568_v18 }
 0x837   :  { %v1810_v9 = vmul.f32 %v2572_v19, %v1638_v27  ;;  %v2574_v31 = vpop.eup %2573 }
 0x839   :  { %v1812_v28 = vadd.f32 %v1811_v22, %v1810_v9 }
 0x83b   :  { %2575 = vtanh.f32 %v1812_v28 }
 0x845   :  { %v2576_v34 = vpop.eup %2575 }
 0x846   :  { %v1814_v13 = vmul.f32 %v2576_v34, %v2574_v31 }
 0x848   :  { %v1815_v32 = vmax.f32 %v1814_v13, 0.0 }
 0x84a   :  { %v1816_v33 = vmax.f32 %v1815_v32, 0.0 }
 0x84c   :  { %1817 = vst [vmem:[%s3120_s4] sm:$0xff] %v1816_v33 }
 0x84d   :  { %1822 = vsyncpa [#allocation4], 1 }

</bundles_post_ra>
